<compile_context>
chip_gen: v6e
topology: v6e:2x2x1
jax: 0.10.0
libtpu: 0.0.40
codegen_flags: <defaults>
</compile_context>

<pallas_src>
import functools

import jax
import jax.numpy as jnp
from jax import lax
from jax.experimental import pallas as pl
from jax.experimental.pallas import tpu as pltpu

_POOL_KS = (5, 9, 13)
_PAD = max(_POOL_KS) // 2                     # total halo (6); cascade consumes 2+2+2
_NEG = float(jnp.finfo(jnp.float32).min)      # stand-in for -inf pool padding


def _round_up(v, m):
    return (v + m - 1) // m * m


def _silu(v):
    return v * jax.nn.sigmoid(v)


def _fold_bn(w, gamma, beta, mean, var, eps=1e-5):
    """Fold inference BatchNorm into a 1x1 conv weight (c_out, c_in) + bias."""
    scale = gamma / jnp.sqrt(var + eps)
    w_eff = (w * scale[:, None]).astype(jnp.float32)
    b_eff = (beta - mean * scale).astype(jnp.float32)[:, None]    # (c_out, 1)
    return w_eff, b_eff


def _max5_valid(z):
    """'valid' 5x5 stride-1 max pool over the last two dims via log-step maxima.

    (c, R, C) -> (c, R-4, C-4); 3 jnp.maximum per axis instead of 4 sequential ones.
    """
    R, C = z.shape[1], z.shape[2]
    a = jnp.maximum(z[:, 0:R - 1], z[:, 1:R])            # rows: 2-window
    b = jnp.maximum(a[:, 0:R - 3], a[:, 2:R - 1])        #       4-window
    r = jnp.maximum(b[:, 0:R - 4], z[:, 4:R])            #       5-window
    a = jnp.maximum(r[:, :, 0:C - 1], r[:, :, 1:C])      # cols: 2-window
    b = jnp.maximum(a[:, :, 0:C - 3], a[:, :, 2:C - 1])  #       4-window
    return jnp.maximum(b[:, :, 0:C - 4], r[:, :, 4:C])   #       5-window


def _spp_kernel(h, w, x_ref, w1_ref, b1_ref, w2_ref, b2_ref, out_ref, ypad_ref):
    """Fused SPP forward for one batch element.

    x_ref   : (1, c1, H*W)          lane-dense input block
    w1_ref  : (c_, c1)              cv1 weight, BN folded (input/MXU dtype)
    b1_ref  : (c_, 1)               cv1 folded BN bias (f32)
    w2_ref  : (4, c2, c_)           cv2 weight, BN folded, pre-split per branch
    b2_ref  : (c2, 1)               cv2 folded BN bias (f32)
    out_ref : (1, c2, H*W)          lane-dense output block
    ypad_ref: (c_, >=H+2P, >=W+2P)  f32 scratch: cv1 output + "-inf" halo
    """
    c_ = w1_ref.shape[0]
    hw = h * w
    P = _PAD

    # ---- cv1: 1x1 conv (channel matmul, f32 accumulate) + folded BN bias + SiLU ----
    y = jnp.dot(w1_ref[...], x_ref[0], preferred_element_type=jnp.float32)
    y = _silu(y + b1_ref[...])                                     # (c_, HW) f32

    # ---- branch 0 (identity) feeds cv2 immediately (interleaved accumulation) ----
    acc = b2_ref[...] + jnp.dot(w2_ref[0], y.astype(w2_ref.dtype),
                                preferred_element_type=jnp.float32)

    # ---- stage y into the padded scratch: 4 halo strips + interior only ----
    ypad_ref[:, 0:P, 0:w + 2 * P] = jnp.full((c_, P, w + 2 * P), _NEG, jnp.float32)
    ypad_ref[:, P + h:h + 2 * P, 0:w + 2 * P] = jnp.full((c_, P, w + 2 * P), _NEG,
                                                         jnp.float32)
    ypad_ref[:, P:P + h, 0:P] = jnp.full((c_, h, P), _NEG, jnp.float32)
    ypad_ref[:, P:P + h, P + w:w + 2 * P] = jnp.full((c_, h, P), _NEG, jnp.float32)
    ypad_ref[:, P:P + h, P:P + w] = y.reshape(c_, h, w)

    # ---- cascaded 5x5 pools (SPPF identity): mp9 = mp5(mp5), mp13 = mp5(mp5(mp5)).
    # Each stage runs on a slab extended by the remaining halo, so later stages see
    # correct "-inf outside the image" semantics without any re-padding or re-store.
    slab = ypad_ref[:, 0:h + 2 * P, 0:w + 2 * P]                   # (c_, h+12, w+12)
    p5w = _max5_valid(slab)                                        # (c_, h+8,  w+8)
    acc = acc + jnp.dot(
        w2_ref[1], p5w[:, 4:4 + h, 4:4 + w].reshape(c_, hw).astype(w2_ref.dtype),
        preferred_element_type=jnp.float32)
    p9w = _max5_valid(p5w)                                         # (c_, h+4,  w+4)
    acc = acc + jnp.dot(
        w2_ref[2], p9w[:, 2:2 + h, 2:2 + w].reshape(c_, hw).astype(w2_ref.dtype),
        preferred_element_type=jnp.float32)
    p13 = _max5_valid(p9w)                                         # (c_, h,    w)
    acc = acc + jnp.dot(
        w2_ref[3], p13.reshape(c_, hw).astype(w2_ref.dtype),
        preferred_element_type=jnp.float32)

    # ---- cv2 SiLU + lane-dense store ----
    out_ref[0] = _silu(acc).astype(out_ref.dtype)


def spp_forward(x, w1, gamma1, beta1, mean1, var1,
                w2, gamma2, beta2, mean2, var2,
                *, k_sizes=_POOL_KS, eps=1e-5):
    """Pallas equivalent of SPP.forward for NCHW inputs (inference BN)."""
    assert tuple(k_sizes) == _POOL_KS, "kernel is specialized to k=(5, 9, 13)"
    n, c1, h, w = x.shape
    c_ = w1.shape[0]
    nb = len(k_sizes) + 1
    c2 = w2.shape[0]
    assert w1.shape == (c_, c1) and w2.shape == (c2, c_ * nb)
    hw = h * w

    # Fold BN into the 1x1 convs (f32), then cast weights to the input dtype so bf16
    # inputs run the MXU at bf16 rate (f32 accumulation via preferred_element_type).
    w1e, b1e = _fold_bn(w1, gamma1, beta1, mean1, var1, eps)
    w2e, b2e = _fold_bn(w2, gamma2, beta2, mean2, var2, eps)
    w1e = w1e.astype(x.dtype)
    # Pre-split cv2's weight per concat branch -> (nb, c2, c_): no in-kernel lane slicing.
    w2s = w2e.reshape(c2, nb, c_).transpose(1, 0, 2).astype(x.dtype)

    x2 = x.reshape(n, c1, hw)                       # lane-dense kernel-boundary layout

    # (8, 128)-rounded padded scratch for the pooling cascade.
    hs = _round_up(h + 2 * _PAD, 8)
    ws = _round_up(w + 2 * _PAD, 128)

    kernel = functools.partial(_spp_kernel, h, w)

    out2 = pl.pallas_call(
        kernel,
        out_shape=jax.ShapeDtypeStruct((n, c2, hw), x.dtype),
        grid=(n,),
        in_specs=[
            pl.BlockSpec((1, c1, hw), lambda b: (b, 0, 0)),
            pl.BlockSpec((c_, c1), lambda b: (0, 0)),
            pl.BlockSpec((c_, 1), lambda b: (0, 0)),
            pl.BlockSpec((nb, c2, c_), lambda b: (0, 0, 0)),
            pl.BlockSpec((c2, 1), lambda b: (0, 0)),
        ],
        out_specs=pl.BlockSpec((1, c2, hw), lambda b: (b, 0, 0)),
        scratch_shapes=[pltpu.VMEM((c_, hs, ws), jnp.float32)],
        compiler_params=pltpu.CompilerParams(
            dimension_semantics=("parallel",),
            # Explicit VMEM budget (v7x has only 64 MiB physical); demo shapes use
            # far less, production tiling should be re-derived against this.
            vmem_limit_bytes=32 * 1024 * 1024),
    )(x2, w1e, b1e, w2s, b2e)

    return out2.reshape(n, c2, h, w)


def _ref_spp(x, w1e, b1e, w2e, b2e, k_sizes=_POOL_KS):
    """Pure-JAX (XLA) reference using the same folded weights."""
    y = jnp.einsum('oc,nchw->nohw', w1e, x) + b1e.reshape(1, -1, 1, 1)
    y = _silu(y)

    def mp(z, k):
        p = k // 2
        return lax.reduce_window(
            z, -jnp.inf, lax.max,
            window_dimensions=(1, 1, k, k),
            window_strides=(1, 1, 1, 1),
            padding=((0, 0), (0, 0), (p, p), (p, p)))

    cat = jnp.concatenate([y] + [mp(y, k) for k in k_sizes], axis=1)
    z = jnp.einsum('oc,nchw->nohw', w2e, cat) + b2e.reshape(1, -1, 1, 1)
    return _silu(z)


if __name__ == "__main__":
    key = jax.random.PRNGKey(0)
    ks = jax.random.split(key, 11)

    # Small SPP config: c1=8 -> c_=4, three pools -> 16 concat channels -> c2=8.
    n, c1, c2, h, w = 2, 8, 8, 16, 16
    c_ = c1 // 2
    nb = len(_POOL_KS) + 1

    x = jax.random.normal(ks[0], (n, c1, h, w), dtype=jnp.float32)

    w1 = jax.random.normal(ks[1], (c_, c1), dtype=jnp.float32) * 0.3
    gamma1 = jax.random.uniform(ks[2], (c_,), minval=0.5, maxval=1.5)
    beta1 = jax.random.normal(ks[3], (c_,)) * 0.1
    mean1 = jax.random.normal(ks[4], (c_,)) * 0.1
    var1 = jax.random.uniform(ks[5], (c_,), minval=0.5, maxval=1.5)

    w2 = jax.random.normal(ks[6], (c2, c_ * nb), dtype=jnp.float32) * 0.2
    gamma2 = jax.random.uniform(ks[7], (c2,), minval=0.5, maxval=1.5)
    beta2 = jax.random.normal(ks[8], (c2,)) * 0.1
    mean2 = jax.random.normal(ks[9], (c2,)) * 0.1
    var2 = jax.random.uniform(ks[10], (c2,), minval=0.5, maxval=1.5)

    params = (w1, gamma1, beta1, mean1, var1, w2, gamma2, beta2, mean2, var2)

    # f32 path: tight check against an XLA reference.
    out = jax.block_until_ready(spp_forward(x, *params))
    w1e, b1e = _fold_bn(w1, gamma1, beta1, mean1, var1)
    w2e, b2e = _fold_bn(w2, gamma2, beta2, mean2, var2)
    ref = _ref_spp(x, w1e, b1e, w2e, b2e)
    assert out.shape == (n, c2, h, w)
    assert out.dtype == jnp.float32
    assert jnp.allclose(out, ref, atol=1e-4, rtol=1e-4)

    # bf16 path: bf16 MXU operands with f32 accumulation + f32 pooling/SiLU.
    out_bf = jax.block_until_ready(spp_forward(x.astype(jnp.bfloat16), *params))
    out_bf32 = out_bf.astype(jnp.float32)
    diff = jnp.abs(out_bf32 - ref)
    assert out_bf.dtype == jnp.bfloat16
    assert bool(jnp.isfinite(out_bf32).all())
    assert float(diff.max()) < 0.8 and float(diff.mean()) < 0.1

    print("KERNEL_OK")
</pallas_src>

<mosaic_0001>
module attributes {stable_mosaic.version = 11 : i64} {
  func.func @_spp_kernel(%arg0: i32, %arg1: memref<1x8x256xf32, #tpu.memory_space<vmem>>, %arg2: memref<4x8xf32, #tpu.memory_space<vmem>>, %arg3: memref<4x1xf32, #tpu.memory_space<vmem>>, %arg4: memref<4x8x4xf32, #tpu.memory_space<vmem>>, %arg5: memref<8x1xf32, #tpu.memory_space<vmem>>, %arg6: memref<1x8x256xf32, #tpu.memory_space<vmem>>, %arg7: memref<4x32x128xf32, #tpu.memory_space<vmem>>) attributes {dimension_semantics = [#tpu.dimension_semantics<parallel>], iteration_bounds = array<i64: 2>, scalar_prefetch = 0 : i64, scratch_operands = 1 : i64, tpu.core_type = #tpu.core_type<tc>, window_params = [{transform_indices = @transform_0, window_bounds = array<i64: 1, 8, 256>}, {pipeline_mode = #tpu.pipeline_mode<synchronous>, transform_indices = @transform_1, window_bounds = array<i64: 4, 8>}, {pipeline_mode = #tpu.pipeline_mode<synchronous>, transform_indices = @transform_2, window_bounds = array<i64: 4, 1>}, {pipeline_mode = #tpu.pipeline_mode<synchronous>, transform_indices = @transform_3, window_bounds = array<i64: 4, 8, 4>}, {pipeline_mode = #tpu.pipeline_mode<synchronous>, transform_indices = @transform_4, window_bounds = array<i64: 8, 1>}, {transform_indices = @transform_5, window_bounds = array<i64: 1, 8, 256>}]} {
    %c0 = arith.constant 0 : index
    %c0_0 = arith.constant 0 : index
    %0 = vector.load %arg2[%c0, %c0_0] : memref<4x8xf32, #tpu.memory_space<vmem>>, vector<4x8xf32>
    %c0_1 = arith.constant 0 : index
    %c0_2 = arith.constant 0 : index
    %c0_3 = arith.constant 0 : index
    %1 = vector.load %arg1[%c0_1, %c0_2, %c0_3] : memref<1x8x256xf32, #tpu.memory_space<vmem>>, vector<1x8x256xf32>
    %2 = vector.shape_cast %1 : vector<1x8x256xf32> to vector<8x256xf32>
    %cst = arith.constant dense<0.000000e+00> : vector<4x256xf32>
    %3 = tpu.matmul %0, %2, %cst {dimension_numbers = #tpu.dot_dimension_numbers<[1], [0], [0], [1], [0, 0, 1, 1], [], []>} : vector<4x8xf32>, vector<8x256xf32>, vector<4x256xf32> -> vector<4x256xf32>
    %c0_4 = arith.constant 0 : index
    %c0_5 = arith.constant 0 : index
    %4 = vector.load %arg3[%c0_4, %c0_5] : memref<4x1xf32, #tpu.memory_space<vmem>>, vector<4x1xf32>
    %5 = vector.broadcast %4 : vector<4x1xf32> to vector<4x256xf32>
    %6 = arith.addf %3, %5 : vector<4x256xf32>
    %7 = arith.negf %6 : vector<4x256xf32>
    %8 = math.exp %7 : vector<4x256xf32>
    %cst_6 = arith.constant 1.000000e+00 : f32
    %9 = vector.broadcast %cst_6 : f32 to vector<4x256xf32>
    %10 = arith.addf %9, %8 : vector<4x256xf32>
    %11 = arith.divf %9, %10 : vector<4x256xf32>
    %12 = arith.mulf %6, %11 : vector<4x256xf32>
    %c0_7 = arith.constant 0 : index
    %c0_8 = arith.constant 0 : index
    %13 = vector.load %arg5[%c0_7, %c0_8] : memref<8x1xf32, #tpu.memory_space<vmem>>, vector<8x1xf32>
    %c0_9 = arith.constant 0 : index
    %c0_10 = arith.constant 0 : index
    %c0_11 = arith.constant 0 : index
    %14 = vector.load %arg4[%c0_9, %c0_10, %c0_11] : memref<4x8x4xf32, #tpu.memory_space<vmem>>, vector<1x8x4xf32>
    %15 = vector.shape_cast %14 : vector<1x8x4xf32> to vector<8x4xf32>
    %cst_12 = arith.constant dense<0.000000e+00> : vector<8x256xf32>
    %16 = tpu.matmul %15, %12, %cst_12 {dimension_numbers = #tpu.dot_dimension_numbers<[1], [0], [0], [1], [0, 0, 1, 1], [], []>} : vector<8x4xf32>, vector<4x256xf32>, vector<8x256xf32> -> vector<8x256xf32>
    %17 = vector.broadcast %13 : vector<8x1xf32> to vector<8x256xf32>
    %18 = arith.addf %17, %16 : vector<8x256xf32>
    %cst_13 = arith.constant -3.40282347E+38 : f32
    %19 = vector.broadcast %cst_13 : f32 to vector<4x6x28xf32>
    %c0_14 = arith.constant 0 : index
    %c0_15 = arith.constant 0 : index
    %c0_16 = arith.constant 0 : index
    %20 = vector.load %arg7[%c0_14, %c0_15, %c0_16] : memref<4x32x128xf32, #tpu.memory_space<vmem>>, vector<4x6x28xf32>
    tpu.vector_store %arg7[%c0_14, %c0_15, %c0_16], %19 {strides = array<i32>} : memref<4x32x128xf32, #tpu.memory_space<vmem>>, vector<4x6x28xf32>,
    %cst_17 = arith.constant -3.40282347E+38 : f32
    %21 = vector.broadcast %cst_17 : f32 to vector<4x6x28xf32>
    %c0_18 = arith.constant 0 : index
    %c22 = arith.constant 22 : index
    %c0_19 = arith.constant 0 : index
    %22 = vector.load %arg7[%c0_18, %c22, %c0_19] : memref<4x32x128xf32, #tpu.memory_space<vmem>>, vector<4x6x28xf32>
    tpu.vector_store %arg7[%c0_18, %c22, %c0_19], %21 {strides = array<i32>} : memref<4x32x128xf32, #tpu.memory_space<vmem>>, vector<4x6x28xf32>,
    %cst_20 = arith.constant -3.40282347E+38 : f32
    %23 = vector.broadcast %cst_20 : f32 to vector<4x16x6xf32>
    %c0_21 = arith.constant 0 : index
    %c6 = arith.constant 6 : index
    %c0_22 = arith.constant 0 : index
    %24 = vector.load %arg7[%c0_21, %c6, %c0_22] : memref<4x32x128xf32, #tpu.memory_space<vmem>>, vector<4x16x6xf32>
    tpu.vector_store %arg7[%c0_21, %c6, %c0_22], %23 {strides = array<i32>} : memref<4x32x128xf32, #tpu.memory_space<vmem>>, vector<4x16x6xf32>,
    %cst_23 = arith.constant -3.40282347E+38 : f32
    %25 = vector.broadcast %cst_23 : f32 to vector<4x16x6xf32>
    %c0_24 = arith.constant 0 : index
    %c6_25 = arith.constant 6 : index
    %c22_26 = arith.constant 22 : index
    %26 = vector.load %arg7[%c0_24, %c6_25, %c22_26] : memref<4x32x128xf32, #tpu.memory_space<vmem>>, vector<4x16x6xf32>
    tpu.vector_store %arg7[%c0_24, %c6_25, %c22_26], %25 {strides = array<i32>} : memref<4x32x128xf32, #tpu.memory_space<vmem>>, vector<4x16x6xf32>,
    %27 = vector.shape_cast %12 : vector<4x256xf32> to vector<4x16x16xf32>
    %c0_27 = arith.constant 0 : index
    %c6_28 = arith.constant 6 : index
    %c6_29 = arith.constant 6 : index
    %28 = vector.load %arg7[%c0_27, %c6_28, %c6_29] : memref<4x32x128xf32, #tpu.memory_space<vmem>>, vector<4x16x16xf32>
    tpu.vector_store %arg7[%c0_27, %c6_28, %c6_29], %27 {strides = array<i32>} : memref<4x32x128xf32, #tpu.memory_space<vmem>>, vector<4x16x16xf32>,
    %c0_30 = arith.constant 0 : index
    %c0_31 = arith.constant 0 : index
    %c0_32 = arith.constant 0 : index
    %29 = vector.load %arg7[%c0_30, %c0_31, %c0_32] : memref<4x32x128xf32, #tpu.memory_space<vmem>>, vector<4x28x28xf32>
    %30 = vector.extract_strided_slice %29 {offsets = [0, 0, 0], sizes = [4, 27, 28], strides = [1, 1, 1]} : vector<4x28x28xf32> to vector<4x27x28xf32>
    %31 = vector.extract_strided_slice %29 {offsets = [0, 1, 0], sizes = [4, 27, 28], strides = [1, 1, 1]} : vector<4x28x28xf32> to vector<4x27x28xf32>
    %32 = arith.maximumf %30, %31 : vector<4x27x28xf32>
    %33 = vector.extract_strided_slice %32 {offsets = [0, 0, 0], sizes = [4, 25, 28], strides = [1, 1, 1]} : vector<4x27x28xf32> to vector<4x25x28xf32>
    %34 = vector.extract_strided_slice %32 {offsets = [0, 2, 0], sizes = [4, 25, 28], strides = [1, 1, 1]} : vector<4x27x28xf32> to vector<4x25x28xf32>
    %35 = arith.maximumf %33, %34 : vector<4x25x28xf32>
    %36 = vector.extract_strided_slice %35 {offsets = [0, 0, 0], sizes = [4, 24, 28], strides = [1, 1, 1]} : vector<4x25x28xf32> to vector<4x24x28xf32>
    %37 = vector.extract_strided_slice %29 {offsets = [0, 4, 0], sizes = [4, 24, 28], strides = [1, 1, 1]} : vector<4x28x28xf32> to vector<4x24x28xf32>
    %38 = arith.maximumf %36, %37 : vector<4x24x28xf32>
    %39 = vector.extract_strided_slice %38 {offsets = [0, 0, 0], sizes = [4, 24, 27], strides = [1, 1, 1]} : vector<4x24x28xf32> to vector<4x24x27xf32>
    %40 = vector.extract_strided_slice %38 {offsets = [0, 0, 1], sizes = [4, 24, 27], strides = [1, 1, 1]} : vector<4x24x28xf32> to vector<4x24x27xf32>
    %41 = arith.maximumf %39, %40 : vector<4x24x27xf32>
    %42 = vector.extract_strided_slice %41 {offsets = [0, 0, 0], sizes = [4, 24, 25], strides = [1, 1, 1]} : vector<4x24x27xf32> to vector<4x24x25xf32>
    %43 = vector.extract_strided_slice %41 {offsets = [0, 0, 2], sizes = [4, 24, 25], strides = [1, 1, 1]} : vector<4x24x27xf32> to vector<4x24x25xf32>
    %44 = arith.maximumf %42, %43 : vector<4x24x25xf32>
    %45 = vector.extract_strided_slice %44 {offsets = [0, 0, 0], sizes = [4, 24, 24], strides = [1, 1, 1]} : vector<4x24x25xf32> to vector<4x24x24xf32>
    %46 = vector.extract_strided_slice %38 {offsets = [0, 0, 4], sizes = [4, 24, 24], strides = [1, 1, 1]} : vector<4x24x28xf32> to vector<4x24x24xf32>
    %47 = arith.maximumf %45, %46 : vector<4x24x24xf32>
    %c1 = arith.constant 1 : index
    %c0_33 = arith.constant 0 : index
    %c0_34 = arith.constant 0 : index
    %48 = vector.load %arg4[%c1, %c0_33, %c0_34] : memref<4x8x4xf32, #tpu.memory_space<vmem>>, vector<1x8x4xf32>
    %49 = vector.shape_cast %48 : vector<1x8x4xf32> to vector<8x4xf32>
    %50 = vector.extract_strided_slice %47 {offsets = [0, 4, 4], sizes = [4, 16, 16], strides = [1, 1, 1]} : vector<4x24x24xf32> to vector<4x16x16xf32>
    %51 = vector.shape_cast %50 : vector<4x16x16xf32> to vector<4x256xf32>
    %cst_35 = arith.constant dense<0.000000e+00> : vector<8x256xf32>
    %52 = tpu.matmul %49, %51, %cst_35 {dimension_numbers = #tpu.dot_dimension_numbers<[1], [0], [0], [1], [0, 0, 1, 1], [], []>} : vector<8x4xf32>, vector<4x256xf32>, vector<8x256xf32> -> vector<8x256xf32>
    %53 = arith.addf %18, %52 : vector<8x256xf32>
    %54 = vector.extract_strided_slice %47 {offsets = [0, 0, 0], sizes = [4, 23, 24], strides = [1, 1, 1]} : vector<4x24x24xf32> to vector<4x23x24xf32>
    %55 = vector.extract_strided_slice %47 {offsets = [0, 1, 0], sizes = [4, 23, 24], strides = [1, 1, 1]} : vector<4x24x24xf32> to vector<4x23x24xf32>
    %56 = arith.maximumf %54, %55 : vector<4x23x24xf32>
    %57 = vector.extract_strided_slice %56 {offsets = [0, 0, 0], sizes = [4, 21, 24], strides = [1, 1, 1]} : vector<4x23x24xf32> to vector<4x21x24xf32>
    %58 = vector.extract_strided_slice %56 {offsets = [0, 2, 0], sizes = [4, 21, 24], strides = [1, 1, 1]} : vector<4x23x24xf32> to vector<4x21x24xf32>
    %59 = arith.maximumf %57, %58 : vector<4x21x24xf32>
    %60 = vector.extract_strided_slice %59 {offsets = [0, 0, 0], sizes = [4, 20, 24], strides = [1, 1, 1]} : vector<4x21x24xf32> to vector<4x20x24xf32>
    %61 = vector.extract_strided_slice %47 {offsets = [0, 4, 0], sizes = [4, 20, 24], strides = [1, 1, 1]} : vector<4x24x24xf32> to vector<4x20x24xf32>
    %62 = arith.maximumf %60, %61 : vector<4x20x24xf32>
    %63 = vector.extract_strided_slice %62 {offsets = [0, 0, 0], sizes = [4, 20, 23], strides = [1, 1, 1]} : vector<4x20x24xf32> to vector<4x20x23xf32>
    %64 = vector.extract_strided_slice %62 {offsets = [0, 0, 1], sizes = [4, 20, 23], strides = [1, 1, 1]} : vector<4x20x24xf32> to vector<4x20x23xf32>
    %65 = arith.maximumf %63, %64 : vector<4x20x23xf32>
    %66 = vector.extract_strided_slice %65 {offsets = [0, 0, 0], sizes = [4, 20, 21], strides = [1, 1, 1]} : vector<4x20x23xf32> to vector<4x20x21xf32>
    %67 = vector.extract_strided_slice %65 {offsets = [0, 0, 2], sizes = [4, 20, 21], strides = [1, 1, 1]} : vector<4x20x23xf32> to vector<4x20x21xf32>
    %68 = arith.maximumf %66, %67 : vector<4x20x21xf32>
    %69 = vector.extract_strided_slice %68 {offsets = [0, 0, 0], sizes = [4, 20, 20], strides = [1, 1, 1]} : vector<4x20x21xf32> to vector<4x20x20xf32>
    %70 = vector.extract_strided_slice %62 {offsets = [0, 0, 4], sizes = [4, 20, 20], strides = [1, 1, 1]} : vector<4x20x24xf32> to vector<4x20x20xf32>
    %71 = arith.maximumf %69, %70 : vector<4x20x20xf32>
    %c2 = arith.constant 2 : index
    %c0_36 = arith.constant 0 : index
    %c0_37 = arith.constant 0 : index
    %72 = vector.load %arg4[%c2, %c0_36, %c0_37] : memref<4x8x4xf32, #tpu.memory_space<vmem>>, vector<1x8x4xf32>
    %73 = vector.shape_cast %72 : vector<1x8x4xf32> to vector<8x4xf32>
    %74 = vector.extract_strided_slice %71 {offsets = [0, 2, 2], sizes = [4, 16, 16], strides = [1, 1, 1]} : vector<4x20x20xf32> to vector<4x16x16xf32>
    %75 = vector.shape_cast %74 : vector<4x16x16xf32> to vector<4x256xf32>
    %cst_38 = arith.constant dense<0.000000e+00> : vector<8x256xf32>
    %76 = tpu.matmul %73, %75, %cst_38 {dimension_numbers = #tpu.dot_dimension_numbers<[1], [0], [0], [1], [0, 0, 1, 1], [], []>} : vector<8x4xf32>, vector<4x256xf32>, vector<8x256xf32> -> vector<8x256xf32>
    %77 = arith.addf %53, %76 : vector<8x256xf32>
    %78 = vector.extract_strided_slice %71 {offsets = [0, 0, 0], sizes = [4, 19, 20], strides = [1, 1, 1]} : vector<4x20x20xf32> to vector<4x19x20xf32>
    %79 = vector.extract_strided_slice %71 {offsets = [0, 1, 0], sizes = [4, 19, 20], strides = [1, 1, 1]} : vector<4x20x20xf32> to vector<4x19x20xf32>
    %80 = arith.maximumf %78, %79 : vector<4x19x20xf32>
    %81 = vector.extract_strided_slice %80 {offsets = [0, 0, 0], sizes = [4, 17, 20], strides = [1, 1, 1]} : vector<4x19x20xf32> to vector<4x17x20xf32>
    %82 = vector.extract_strided_slice %80 {offsets = [0, 2, 0], sizes = [4, 17, 20], strides = [1, 1, 1]} : vector<4x19x20xf32> to vector<4x17x20xf32>
    %83 = arith.maximumf %81, %82 : vector<4x17x20xf32>
    %84 = vector.extract_strided_slice %83 {offsets = [0, 0, 0], sizes = [4, 16, 20], strides = [1, 1, 1]} : vector<4x17x20xf32> to vector<4x16x20xf32>
    %85 = vector.extract_strided_slice %71 {offsets = [0, 4, 0], sizes = [4, 16, 20], strides = [1, 1, 1]} : vector<4x20x20xf32> to vector<4x16x20xf32>
    %86 = arith.maximumf %84, %85 : vector<4x16x20xf32>
    %87 = vector.extract_strided_slice %86 {offsets = [0, 0, 0], sizes = [4, 16, 19], strides = [1, 1, 1]} : vector<4x16x20xf32> to vector<4x16x19xf32>
    %88 = vector.extract_strided_slice %86 {offsets = [0, 0, 1], sizes = [4, 16, 19], strides = [1, 1, 1]} : vector<4x16x20xf32> to vector<4x16x19xf32>
    %89 = arith.maximumf %87, %88 : vector<4x16x19xf32>
    %90 = vector.extract_strided_slice %89 {offsets = [0, 0, 0], sizes = [4, 16, 17], strides = [1, 1, 1]} : vector<4x16x19xf32> to vector<4x16x17xf32>
    %91 = vector.extract_strided_slice %89 {offsets = [0, 0, 2], sizes = [4, 16, 17], strides = [1, 1, 1]} : vector<4x16x19xf32> to vector<4x16x17xf32>
    %92 = arith.maximumf %90, %91 : vector<4x16x17xf32>
    %93 = vector.extract_strided_slice %92 {offsets = [0, 0, 0], sizes = [4, 16, 16], strides = [1, 1, 1]} : vector<4x16x17xf32> to vector<4x16x16xf32>
    %94 = vector.extract_strided_slice %86 {offsets = [0, 0, 4], sizes = [4, 16, 16], strides = [1, 1, 1]} : vector<4x16x20xf32> to vector<4x16x16xf32>
    %95 = arith.maximumf %93, %94 : vector<4x16x16xf32>
    %c3 = arith.constant 3 : index
    %c0_39 = arith.constant 0 : index
    %c0_40 = arith.constant 0 : index
    %96 = vector.load %arg4[%c3, %c0_39, %c0_40] : memref<4x8x4xf32, #tpu.memory_space<vmem>>, vector<1x8x4xf32>
    %97 = vector.shape_cast %96 : vector<1x8x4xf32> to vector<8x4xf32>
    %98 = vector.shape_cast %95 : vector<4x16x16xf32> to vector<4x256xf32>
    %cst_41 = arith.constant dense<0.000000e+00> : vector<8x256xf32>
    %99 = tpu.matmul %97, %98, %cst_41 {dimension_numbers = #tpu.dot_dimension_numbers<[1], [0], [0], [1], [0, 0, 1, 1], [], []>} : vector<8x4xf32>, vector<4x256xf32>, vector<8x256xf32> -> vector<8x256xf32>
    %100 = arith.addf %77, %99 : vector<8x256xf32>
    %101 = arith.negf %100 : vector<8x256xf32>
    %102 = math.exp %101 : vector<8x256xf32>
    %cst_42 = arith.constant 1.000000e+00 : f32
    %103 = vector.broadcast %cst_42 : f32 to vector<8x256xf32>
    %104 = arith.addf %103, %102 : vector<8x256xf32>
    %105 = arith.divf %103, %104 : vector<8x256xf32>
    %106 = arith.mulf %100, %105 : vector<8x256xf32>
    %c0_43 = arith.constant 0 : index
    %c0_44 = arith.constant 0 : index
    %c0_45 = arith.constant 0 : index
    %107 = vector.load %arg6[%c0_43, %c0_44, %c0_45] : memref<1x8x256xf32, #tpu.memory_space<vmem>>, vector<1x8x256xf32>
    %108 = vector.shape_cast %107 : vector<1x8x256xf32> to vector<8x256xf32>
    %109 = vector.shape_cast %106 : vector<8x256xf32> to vector<1x8x256xf32>
    tpu.vector_store %arg6[%c0_43, %c0_44, %c0_45], %109 {strides = array<i32>} : memref<1x8x256xf32, #tpu.memory_space<vmem>>, vector<1x8x256xf32>,
    return
  }
  func.func @transform_0(%arg0: i32) -> (i32, i32, i32) {
    %c0_i32 = arith.constant 0 : i32
    %c0_i32_0 = arith.constant 0 : i32
    %c0_i32_1 = arith.constant 0 : i32
    return %arg0, %c0_i32, %c0_i32_0 : i32, i32, i32
  }
  func.func @transform_1(%arg0: i32) -> (i32, i32) {
    %c0_i32 = arith.constant 0 : i32
    %c0_i32_0 = arith.constant 0 : i32
    %c0_i32_1 = arith.constant 0 : i32
    return %c0_i32, %c0_i32_0 : i32, i32
  }
  func.func @transform_2(%arg0: i32) -> (i32, i32) {
    %c0_i32 = arith.constant 0 : i32
    %c0_i32_0 = arith.constant 0 : i32
    %c0_i32_1 = arith.constant 0 : i32
    return %c0_i32, %c0_i32_0 : i32, i32
  }
  func.func @transform_3(%arg0: i32) -> (i32, i32, i32) {
    %c0_i32 = arith.constant 0 : i32
    %c0_i32_0 = arith.constant 0 : i32
    %c0_i32_1 = arith.constant 0 : i32
    %c0_i32_2 = arith.constant 0 : i32
    return %c0_i32, %c0_i32_0, %c0_i32_1 : i32, i32, i32
  }
  func.func @transform_4(%arg0: i32) -> (i32, i32) {
    %c0_i32 = arith.constant 0 : i32
    %c0_i32_0 = arith.constant 0 : i32
    %c0_i32_1 = arith.constant 0 : i32
    return %c0_i32, %c0_i32_0 : i32, i32
  }
  func.func @transform_5(%arg0: i32) -> (i32, i32, i32) {
    %c0_i32 = arith.constant 0 : i32
    %c0_i32_0 = arith.constant 0 : i32
    %c0_i32_1 = arith.constant 0 : i32
    return %arg0, %c0_i32, %c0_i32_0 : i32, i32, i32
  }
}

</mosaic_0001>

<bundles_post_ra>
// kernel: tpu_custom_call.1
= control target key start
LH: loop header
LB: loop body
LE: loop exit
PB: predicated region body
PF: predicated region fallthrough
CT: control target
= control target key end

     0   :  { %10 = vsyncpa [#allocation4], 0  ;;  %s4105_s0 = inlined_call_operand.vmem [shape: f32[2,8,256], index: 0, kind: input, shape index: {}]   ;;  %s4106_s1 = inlined_call_operand.vmem [shape: f32[4,8], index: 1, kind: input, shape index: {}]   ;;  %s4107_s2 = inlined_call_operand.vmem [shape: f32[4,1], index: 2, kind: input, shape index: {}]   ;;  %s4108_s3 = inlined_call_operand.vmem [shape: f32[4,8,4], index: 3, kind: input, shape index: {}]   ;;  %s4109_s4 = inlined_call_operand.vmem [shape: f32[8,1], index: 4, kind: input, shape index: {}]   ;;  %s4110_s5 = inlined_call_operand.hbm [shape: f32[2,8,256], index: 5, kind: output, shape index: {}]  }
   0x1   :  { %12 = vsyncpa [#allocation4 + $0x1], 0  ;;  %s2867_s18 = smov 0   ;;  %s2869_s19 = smov 0  }
   0x2   :  { %s2871_s20 = smov 0   ;;  %s2873_s21 = smov 0  }
   0x3 LB: > { %s2888_s22 = sadd.s32 4294967295, %s2818_s21   ;;  %s2651_s23 = sadd.s32 4294967294, %s2818_s21   ;;  %s2818_s21 = sphi %s2873_s21, %s4116_s21   ;;  %s2814_s20 = sphi %s2871_s20, %s4115_s20   ;;  %s2810_s19 = sphi %s2869_s19, %s4114_s19   ;;  %s2806_s18 = sphi %s2867_s18, %s4113_s18  }
   0x4   : > { %s2892_s24 = sadd.s32 1, %s2818_s21   ;;  %s135_s25 = sadd.s32 1, %s2814_s20 }
   0x5   : > { %s132_s26 = ssub.s32 %s2818_s21, %s2892_s24  ;;  %p145_p0 = scmp.ne.s32.totalorder %s2814_s20, %s2810_s19 }
   0x6   : > { %p133_p1 = scmp.eq.s32.totalorder %s132_s26, 0  ;;  %p146_p2 = scmp.eq.s32.totalorder %s2888_s22, 1 }
   0x7   : > { %p151_p3 = scmp.ne.s32.totalorder %s2810_s19, %s2806_s18  ;;  %p152_p4 = scmp.eq.s32.totalorder %s2651_s23, 1 }
   0x8   : > { %s2903_s27 = scalar_select %p133_p1, %s2814_s20, %s135_s25  }
   0x9   : > { %p2905_p5 = por %p146_p2, %p145_p0  ;;  %p2909_p6 = por %p152_p4, %p151_p3 }
   0xa   : > { %p2654_p7 = scmp.ge.s32.totalorder %s2818_s21, 1  ;;  %p190_p8 = scmp.lt.s32.totalorder %s2818_s21, 3 }
   0xc   : > { %p191_p9 = pnand %p2654_p7, %p190_p8 }
   0xd   : > { %p218_p10 = scmp.lt.s32.totalorder (!%p191_p9), %s2888_s22, 1  ;;  %s2822_s14 = smov (!%p191_p9), 96  }
   0xe   : > { %194 = sbr.rel (%p191_p9) target bundleno = 1739 (0x6cb), region = 40  ;;  %s2823_s15 = smov (!%p191_p9), 112  }
   0xf   : > { %s2824_s16 = smov (!%p191_p9), 80   ;;  %s2825_s17 = smov (!%p191_p9), 64  }
  0x10   : > { %s2826_s23 = smov (!%p191_p9), 48   ;;  %s2827_s25 = smov (!%p191_p9), 32  }
  0x11   : > { %s2828_s26 = smov (!%p191_p9), 16   ;;  %s2832_s30 = smov (!%p191_p9), 6  }
  0x12   : > { %s2833_s6 = smov (!%p191_p9), 127   ;;  %s2836_s13 = smov (!%p191_p9), [#allocation3]  }
  0x13   : > { %v2820_v0 = vmov 0.0   ;;  %v2821_v1 = vmov 0   ;;  %v226_v2 = vld [vmem:[%s4107_s2] sm:$0xf]  ;;  %s219_s7 = scalar_select %p218_p10, %s2888_s22, 1  ;;  %vm232_vm0 = vcmask 64512   ;;  %v485_v26 = vlaneseq }
  0x14   : > { %300 = vmatprep.mubr.f32.mxu0 %v2820_v0  ;;  %2740 = vset.pattern.permute.xlu0 %v2821_v1  ;;  %v223_v5 = vld [vmem:[%s4106_s1] sm:$0xf]  ;;  %vm327_vm1 = vcmask 1043456   ;;  %vm421_vm2 = vcmask 48128   ;;  %vm430_vm3 = vcmask 228528   ;;  %vm412_vm4 = vcmask 226304  }
  0x15   : > { %229 = vperm.xlu0 %2740, %v226_v2   ;;  %398 = vmatprep.mubr.f32.mxu1 %v2820_v0  ;;  %s2683_s8 = sshll.u32 %s219_s7, 4  ;;  %v2829_v21 = vmov -3.4028235e+38   ;;  %v2830_v24 = vmov 1983009808   ;;  %v486_v30 = vshrl.u32 %v485_v26, 7 }
  0x16   : > { %2741 = vset.pattern.permute.xlu1 %v2821_v1  ;;  %s222_s11 = scalar_lea.vmem %s4105_s0, %s2683_s8  ;;  %422 = vst.msk [vmem:[#allocation2 + $0x6] sm:$0xff] %vm421_vm2, %v2829_v21  ;;  %423 = vst.msk [vmem:[#allocation2 + $0xe] sm:$0xff] %vm421_vm2, %v2829_v21  ;;  %v483_v25 = vunpack.c.l.s4 %v2830_v24  ;;  %v2831_v32 = vmov 1934713408   ;;  %vm649_vm5 = vcmask 179248   ;;  %vm690_vm6 = vcmask 1046528  }
  0x17   : > { %v225_v3 = vld [vmem:[%s222_s11 + $0x8] sm:$0xff]  ;;  %v224_v4 = vld [vmem:[%s222_s11] sm:$0xff]  ;;  %424 = vst.msk [vmem:[#allocation2 + $0x26] sm:$0xff] %vm421_vm2, %v2829_v21  ;;  %425 = vst.msk [vmem:[#allocation2 + $0x2e] sm:$0xff] %vm421_vm2, %v2829_v21  ;;  %v516_v33 = vunpack.c.l.s4 %v2831_v32  ;;  %vm767_vm7 = vcmask 1045504   ;;  %s2834_s7 = smov 124  }
  0x18   : > { %266 = vmatprep.subr.mxu0 %v225_v3  ;;  %426 = vst.msk [vmem:[#allocation2 + $0x46] sm:$0xff] %vm421_vm2, %v2829_v21  ;;  %427 = vst.msk [vmem:[#allocation2 + $0x4e] sm:$0xff] %vm421_vm2, %v2829_v21  ;;  %v484_v29 = vunpack.c.0.s8 %v483_v25  ;;  %s2835_s8 = smov 126   ;;  %vm323_vm8 = vcmask 31744   ;;  %vm1290_vm9 = vcmask 130048   ;;  %vm1292_vm10 = vcmask 261120  }
  0x19   : > { %267 = vmatpush1.msra.mxu0 %v224_v4  ;;  %428 = vst.msk [vmem:[#allocation2 + $0x66] sm:$0xff] %vm421_vm2, %v2829_v21  ;;  %429 = vst.msk [vmem:[#allocation2 + $0x6e] sm:$0xff] %vm421_vm2, %v2829_v21  ;;  %v517_v40 = vunpack.c.0.s8 %v516_v33  ;;  %vm1294_vm11 = vcmask 392192   ;;  %vm1298_vm12 = vcmask 654336   ;;  %vm1296_vm13 = vcmask 523264  }
  0x1a   : > { %2658 = vmatmul.mubr.msk.f32.vlgmr.msra.gmra.mxu0 %vm232_vm0, %v223_v5  ;;  %431 = vst.msk [vmem:[#allocation2 + $0x6] sm:$0xff] %vm430_vm3, %v2829_v21  ;;  %433 = vst.msk [vmem:[#allocation2 + $0x26] sm:$0xff] %vm430_vm3, %v2829_v21  ;;  %v2973_v36 = vsub.s32 %v484_v29, %v486_v30  ;;  %vm1300_vm14 = vcmask 785408   ;;  %vm1302_vm15 = vcmask 916480  }
  0x1b   : > { %1384 = vmatprep.mubr.f32.mxu0 %v2820_v0  ;;  %432 = vst.msk [vmem:[#allocation2 + $0xe] sm:$0xff] %vm430_vm3, %v2829_v21  ;;  %434 = vst.msk [vmem:[#allocation2 + $0x2e] sm:$0xff] %vm430_vm3, %v2829_v21  ;;  %v2980_v48 = vsub.s32 %v517_v40, %v486_v30 }
  0x1c   : > { %435 = vst.msk [vmem:[#allocation2 + $0x46] sm:$0xff] %vm430_vm3, %v2829_v21  ;;  %436 = vst.msk [vmem:[#allocation2 + $0x4e] sm:$0xff] %vm430_vm3, %v2829_v21 }
  0x1d   : > { %437 = vst.msk [vmem:[#allocation2 + $0x66] sm:$0xff] %vm430_vm3, %v2829_v21  ;;  %438 = vst.msk [vmem:[#allocation2 + $0x6e] sm:$0xff] %vm430_vm3, %v2829_v21 }
  0x1e   : > { %417 = vst.msk [vmem:[#allocation2 + $0x16] sm:$0x3f] %vm412_vm4, %v2829_v21  ;;  %413 = vst.msk [vmem:[#allocation2] sm:$0x3f] %vm412_vm4, %v2829_v21 }
  0x1f   : > { %414 = vst.msk [vmem:[#allocation2 + $0x20] sm:$0x3f] %vm412_vm4, %v2829_v21  ;;  %415 = vst.msk [vmem:[#allocation2 + $0x40] sm:$0x3f] %vm412_vm4, %v2829_v21 }
  0x20   : > { %416 = vst.msk [vmem:[#allocation2 + $0x60] sm:$0x3f] %vm412_vm4, %v2829_v21  ;;  %418 = vst.msk [vmem:[#allocation2 + $0x36] sm:$0x3f] %vm412_vm4, %v2829_v21 }
  0x21   : > { %419 = vst.msk [vmem:[#allocation2 + $0x56] sm:$0x3f] %vm412_vm4, %v2829_v21  ;;  %420 = vst.msk [vmem:[#allocation2 + $0x76] sm:$0x3f] %vm412_vm4, %v2829_v21 }
  0x25   : > { %v661_v26 = vld [vmem:[#allocation2 + $0x18] sm:$0xf] }
  0x28   : > { %v3010_v32 = vld [vmem:[#allocation2 + $0x78] sm:$0xf] }
  0x90   : > { %v230_v6 = vpop.permute.xlu0 %229 }
  0xda   : > { %v302_v7 = vpop.f32.mrf.mxu0 }
  0xdb   : > { %v303_v8 = vadd.f32 %v302_v7, %v230_v6 }
  0xdc   : > { %v304_v9 = vpop.f32.mrf.mxu0 }
  0xdd   : > { %v2659_v10 = vmul.f32 -1.442695, %v303_v8  ;;  %v305_v11 = vadd.f32 %v304_v9, %v230_v6 }
  0xdf   : > { %2742 = vpow2.f32 %v2659_v10  ;;  %v2660_v12 = vmul.f32 -1.442695, %v305_v11 }
  0xe1   : > { %2744 = vpow2.f32 %v2660_v12 }
  0xec   : > { %v2743_v13 = vpop.eup %2742 }
  0xed   : > { %v313_v14 = vadd.f32 1.0, %v2743_v13 }
  0xee   : > { %v2745_v15 = vpop.eup %2744 }
  0xef   : > { %2746 = vrcp.f32 %v313_v14  ;;  %v314_v16 = vadd.f32 1.0, %v2745_v15 }
  0xf1   : > { %2748 = vrcp.f32 %v314_v16 }
  0xfc   : > { %v2747_v17 = vpop.eup %2746 }
  0xfd   : > { %v2929_v18 = vmul.f32 %v2747_v17, %v303_v8 }
  0xfe   : > { %v2749_v19 = vpop.eup %2748 }
  0xff   : > { %v2931_v20 = vmul.f32 %v2749_v19, %v305_v11  ;;  %442 = vrot.lane.b32.xlu1 %v2929_v18, %s2822_s14  ;;  %439 = vrot.lane.b32.xlu0 %v2929_v18, %s2823_s15 }
 0x101   : > { %2661 = vmatprep.subr.msk.mxu1 %vm327_vm1, %v2931_v20 }
 0x102   : > { %2662 = vmatpush1.msk.msra.mxu1 %vm327_vm1, %v2929_v18 }
 0x103   : > { %445 = vrot.lane.b32.xlu1 %v2929_v18, %s2824_s16  ;;  %448 = vrot.lane.b32.xlu0 %v2929_v18, %s2825_s17 }
 0x107   : > { %451 = vrot.lane.b32.xlu1 %v2929_v18, %s2826_s23  ;;  %454 = vrot.lane.b32.xlu0 %v2929_v18, %s2827_s25 }
 0x10b   : > { %457 = vrot.lane.b32.xlu1 %v2929_v18, %s2828_s26  ;;  %460 = vrot.lane.b32.xlu0 %v2931_v20, %s2823_s15 }
 0x10f   : > { %463 = vrot.lane.b32.xlu1 %v2931_v20, %s2822_s14  ;;  %466 = vrot.lane.b32.xlu0 %v2931_v20, %s2824_s16 }
 0x113   : > { %469 = vrot.lane.b32.xlu1 %v2931_v20, %s2825_s17  ;;  %472 = vrot.lane.b32.xlu0 %v2931_v20, %s2826_s23 }
 0x117   : > { %475 = vrot.lane.b32.xlu1 %v2931_v20, %s2827_s25  ;;  %478 = vrot.lane.b32.xlu0 %v2931_v20, %s2828_s26 }
 0x171   : > { %v443_v22 = vpop.permute.xlu1 %442  ;;  %v440_v23 = vpop.permute.xlu0 %439 }
 0x172   : > { %v481_v37 = vcombine.low %v2929_v18, %v443_v22 }
 0x174   : > { %v488_v43 = vrot.slane %v481_v37, %v2973_v36 }
 0x175   : > { %v446_v27 = vpop.permute.xlu1 %445  ;;  %v449_v28 = vpop.permute.xlu0 %448 }
 0x176   : > { %v489_v31 = vcombine.low %v440_v23, %v446_v27  ;;  %v3006_v27 = vld [vmem:[#allocation2 + $0x38] sm:$0xf] }
 0x177   : > { %v703_v33 = vrot.slane %v3006_v27, 1 }
 0x178   : > { %v496_v38 = vrot.slane %v489_v31, %v2973_v36  ;;  %v696_v31 = vrot.slane %v661_v26, 1 }
 0x179   : > { %v452_v34 = vpop.permute.xlu1 %451  ;;  %v455_v35 = vpop.permute.xlu0 %454 }
 0x17a   : > { %v497_v39 = vcombine.low %v449_v28, %v455_v35  ;;  %v513_v45 = vcombine.low %v488_v43, %v496_v38  ;;  %v514_v60 = vcombine.high %v488_v43, %v496_v38  ;;  %v3008_v28 = vld [vmem:[#allocation2 + $0x58] sm:$0xf]  ;;  %v717_v35 = vrot.slane %v3010_v32, 1 }
 0x17b   : > { %v738_v38 = vmax.f32 %v661_v26, %v696_v31 }
 0x17c   : > { %v504_v46 = vrot.slane %v497_v39, %v2973_v36  ;;  %v521_v54 = vrot.slane %v513_v45, %v2980_v48  ;;  %v528_v9 = vrot.slane %v514_v60, %v2980_v48  ;;  %v3019_v39 = vmax.f32 %v3006_v27, %v703_v33 }
 0x17d   : > { %v458_v41 = vpop.permute.xlu1 %457  ;;  %v461_v42 = vpop.permute.xlu0 %460 }
 0x17e   : > { %v505_v44 = vcombine.low %v452_v34, %v458_v41  ;;  %v710_v34 = vrot.slane %v3008_v28, 1  ;;  %v825_v41 = vrot.slane %v661_v26, 4 }
 0x180   : > { %v512_v47 = vrot.slane %v505_v44, %v2973_v36  ;;  %v3024_v40 = vmax.f32 %v3008_v28, %v710_v34 }
 0x181   : > { %v464_v49 = vpop.permute.xlu1 %463  ;;  %v467_v50 = vpop.permute.xlu0 %466 }
 0x182   : > { %v529_v51 = vcombine.low %v504_v46, %v512_v47  ;;  %v549_v52 = vcombine.low %v2931_v20, %v464_v49  ;;  %v557_v53 = vcombine.low %v461_v42, %v467_v50  ;;  %v530_v58 = vcombine.high %v504_v46, %v512_v47 }
 0x183   : > { %v3029_v42 = vmax.f32 %v3010_v32, %v717_v35  ;;  %v773_v46 = vrot.slane %v738_v38, 2  ;;  %v832_v49 = vrot.slane %v3006_v27, 4  ;;  %v839_v50 = vrot.slane %v3008_v28, 4 }
 0x184   : > { %v537_v55 = vrot.slane %v529_v51, %v2980_v48  ;;  %v556_v61 = vrot.slane %v549_v52, %v2973_v36  ;;  %v564_v62 = vrot.slane %v557_v53, %v2973_v36  ;;  %v544_v5 = vrot.slane %v530_v58, %v2980_v48 }
 0x185   : > { %v470_v56 = vpop.permute.xlu1 %469  ;;  %v473_v57 = vpop.permute.xlu0 %472  ;;  %v846_v58 = vrot.slane %v3010_v32, 4 }
 0x186   : > { %v545_v59 = vcombine.low %v521_v54, %v537_v55  ;;  %v546_v4 = vcombine.high %v521_v54, %v537_v55  ;;  %v581_v6 = vcombine.low %v556_v61, %v564_v62  ;;  %v547_v11 = vcombine.low %v528_v9, %v544_v5 }
 0x187   : > { %v548_v15 = vcombine.high %v528_v9, %v544_v5  ;;  %v582_v17 = vcombine.high %v556_v61, %v564_v62  ;;  %v780_v54 = vrot.slane %v3019_v39, 2  ;;  %v787_v55 = vrot.slane %v3024_v40, 2 }
 0x188   : > { %625 = vrot.lane.b32.xlu1 %v545_v59, %s2832_s30  ;;  %v589_v12 = vrot.slane %v581_v6, %v2980_v48 }
 0x189   : > { %v476_v63 = vpop.permute.xlu1 %475  ;;  %v479_v1 = vpop.permute.xlu0 %478  ;;  %v596_v20 = vrot.slane %v582_v17, %v2980_v48 }
 0x18a   : > { %v565_v2 = vcombine.low %v470_v56, %v476_v63  ;;  %v573_v3 = vcombine.low %v473_v57, %v479_v1  ;;  %v794_v63 = vrot.slane %v3029_v42, 2 }
 0x18c   : > { %v572_v7 = vrot.slane %v565_v2, %v2973_v36  ;;  %v580_v8 = vrot.slane %v573_v3, %v2973_v36  ;;  %629 = vrot.lane.b32.xlu1 %v546_v4, %s2832_s30 }
 0x18e   : > { %v597_v10 = vcombine.low %v572_v7, %v580_v8  ;;  %v598_v14 = vcombine.high %v572_v7, %v580_v8 }
 0x190   : > { %633 = vrot.lane.b32.xlu1 %v547_v11, %s2832_s30  ;;  %v605_v13 = vrot.slane %v597_v10, %v2980_v48  ;;  %v612_v19 = vrot.slane %v598_v14, %v2980_v48 }
 0x192   : > { %v613_v16 = vcombine.low %v589_v12, %v605_v13  ;;  %v614_v18 = vcombine.high %v589_v12, %v605_v13  ;;  %v615_v21 = vcombine.low %v596_v20, %v612_v19  ;;  %v616_v22 = vcombine.high %v596_v20, %v612_v19 }
 0x194   : > { %637 = vrot.lane.b32.xlu1 %v548_v15, %s2832_s30  ;;  %627 = vrot.lane.b32.xlu0 %v613_v16, %s2832_s30 }
 0x198   : > { %631 = vrot.lane.b32.xlu0 %v614_v18, %s2832_s30 }
 0x19c   : > { %635 = vrot.lane.b32.xlu0 %v615_v21, %s2832_s30 }
 0x1a0   : > { %639 = vrot.lane.b32.xlu0 %v616_v22, %s2832_s30  ;;  %s2684_s30 = sshll.u32 %s2888_s22, 8  ;;  %s2762_s22 = sshll.u32 %s2836_s13, 4  ;;  %s2763_s22 = int_to_ptr.vmem [resolvable:$false] %s2762_s22 }
 0x1a1   : > { %s2590_s10 = scalar_lea.hbm %s4110_s5, %s2684_s30 }
 0x1fa   : > { %v626_v23 = vpop.permute.xlu1 %625 }
 0x1fb   : > { %650 = vst.msk [vmem:[#allocation2 + $0x6] sm:$0xff] %vm649_vm5, %v626_v23 }
 0x1fe   : > { %v630_v24 = vpop.permute.xlu1 %629 }
 0x1ff   : > { %652 = vst.msk [vmem:[#allocation2 + $0x26] sm:$0xff] %vm649_vm5, %v630_v24 }
 0x202   : > { %v634_v25 = vpop.permute.xlu1 %633  ;;  %v3031_v43 = vld [vmem:[#allocation2] sm:$0xff] }
 0x203   : > { %654 = vst.msk [vmem:[#allocation2 + $0x46] sm:$0xff] %vm649_vm5, %v634_v25  ;;  %v691_v59 = vrot.slane %v3031_v43, 1 }
 0x206   : > { %v638_v29 = vpop.permute.xlu1 %637  ;;  %v628_v30 = vpop.permute.xlu0 %627  ;;  %v3037_v51 = vld [vmem:[#allocation2 + $0x20] sm:$0xff] }
 0x207   : > { %656 = vst.msk [vmem:[#allocation2 + $0x66] sm:$0xff] %vm649_vm5, %v638_v29  ;;  %651 = vst.msk [vmem:[#allocation2 + $0xe] sm:$0xff] %vm649_vm5, %v628_v30  ;;  %v698_v1 = vrot.slane %v3037_v51, 1  ;;  %v827_v7 = vrot.slane %v3037_v51, 4 }
 0x20a   : > { %v632_v37 = vpop.permute.xlu0 %631  ;;  %v3046_v60 = vld [vmem:[#allocation2 + $0x40] sm:$0xff] }
 0x20b   : > { %653 = vst.msk [vmem:[#allocation2 + $0x2e] sm:$0xff] %vm649_vm5, %v632_v37  ;;  %v705_v12 = vrot.slane %v3046_v60, 1 }
 0x20e   : > { %v636_v44 = vpop.permute.xlu0 %635  ;;  %v660_v45 = vld [vmem:[#allocation2 + $0x10] sm:$0xff]  ;;  %v3033_v47 = vld [vmem:[#allocation2 + $0x8] sm:$0xff] }
 0x20f   : > { %655 = vst.msk [vmem:[#allocation2 + $0x4e] sm:$0xff] %vm649_vm5, %v636_v44  ;;  %v694_v52 = vrot.slane %v660_v45, 1  ;;  %v692_v53 = vrot.slane %v3033_v47, 1  ;;  %v823_v56 = vrot.slane %v660_v45, 4  ;;  %v821_v57 = vrot.slane %v3033_v47, 4 }
 0x211   : > { %v697_v61 = vsel %vm690_vm6, %v694_v52, %v696_v31  ;;  %v695_v62 = vsel %vm690_vm6, %v692_v53, %v694_v52  ;;  %v693_v8 = vsel %vm690_vm6, %v691_v59, %v692_v53  ;;  %v826_v14 = vsel %vm327_vm1, %v823_v56, %v825_v41 }
 0x212   : > { %v640_v2 = vpop.permute.xlu0 %639  ;;  %v737_v3 = vmax.f32 %v660_v45, %v697_v61  ;;  %v3053_v4 = vmax.f32 %v3033_v47, %v695_v62  ;;  %v664_v5 = vld [vmem:[#allocation2 + $0x30] sm:$0xff]  ;;  %v3055_v6 = vld [vmem:[#allocation2 + $0x28] sm:$0xff]  ;;  %v824_v16 = vsel %vm327_vm1, %v821_v57, %v823_v56  ;;  %v3073_v20 = vmax.f32 %v3031_v43, %v693_v8 }
 0x213   : > { %657 = vst.msk [vmem:[#allocation2 + $0x6e] sm:$0xff] %vm649_vm5, %v640_v2  ;;  %v701_v9 = vrot.slane %v664_v5, 1  ;;  %v830_v10 = vrot.slane %v664_v5, 4  ;;  %v699_v11 = vrot.slane %v3055_v6, 1  ;;  %v828_v19 = vrot.slane %v3055_v6, 4 }
 0x214   : > { %v771_v13 = vrot.slane %v737_v3, 2  ;;  %v769_v15 = vrot.slane %v3053_v4, 2 }
 0x215   : > { %v704_v17 = vsel %vm690_vm6, %v701_v9, %v703_v33  ;;  %v702_v18 = vsel %vm690_vm6, %v699_v11, %v701_v9  ;;  %v833_v30 = vsel %vm327_vm1, %v830_v10, %v832_v49 }
 0x216   : > { %v774_v21 = vsel %vm767_vm7, %v771_v13, %v773_v46  ;;  %v772_v22 = vsel %vm767_vm7, %v769_v15, %v771_v13  ;;  %v741_v23 = vmax.f32 %v664_v5, %v704_v17  ;;  %v3080_v24 = vmax.f32 %v3055_v6, %v702_v18  ;;  %v668_v25 = vld [vmem:[#allocation2 + $0x50] sm:$0xff]  ;;  %v3082_v26 = vld [vmem:[#allocation2 + $0x48] sm:$0xff]  ;;  %v3116_v13 = vld [vmem:[#allocation2 + $0x60] sm:$0xff] }
 0x217   : > { %v810_v27 = vmax.f32 %v737_v3, %v774_v21  ;;  %v809_v29 = vmax.f32 %v3053_v4, %v772_v22  ;;  %v708_v31 = vrot.slane %v668_v25, 1  ;;  %v837_v38 = vrot.slane %v668_v25, 4 }
 0x218   : > { %v778_v33 = vrot.slane %v741_v23, 2  ;;  %v776_v37 = vrot.slane %v3080_v24, 2  ;;  %v706_v39 = vrot.slane %v3082_v26, 1  ;;  %v835_v46 = vrot.slane %v3082_v26, 4 }
 0x219   : > { %v3088_v41 = vmax.f32 %v810_v27, %v826_v14  ;;  %v3090_v44 = vmax.f32 %v809_v29, %v824_v16  ;;  %v711_v45 = vsel %vm690_vm6, %v708_v31, %v710_v34  ;;  %v831_v3 = vsel %vm327_vm1, %v828_v19, %v830_v10 }
 0x21a   : > { %v781_v52 = vsel %vm767_vm7, %v778_v33, %v780_v54  ;;  %v779_v49 = vsel %vm767_vm7, %v776_v37, %v778_v33  ;;  %v745_v53 = vmax.f32 %v668_v25, %v711_v45  ;;  %v709_v56 = vsel %vm690_vm6, %v706_v39, %v708_v31  ;;  %v672_v59 = vld [vmem:[#allocation2 + $0x70] sm:$0xff]  ;;  %v3101_v61 = vld [vmem:[#allocation2 + $0x68] sm:$0xff] }
 0x21b   : > { %888 = vrot.lane.b32.xlu0 %v3088_v41, %s2833_s6  ;;  %886 = vrot.lane.b32.xlu1 %v3090_v44, %s2833_s6  ;;  %v813_v34 = vmax.f32 %v741_v23, %v781_v52  ;;  %v812_v54 = vmax.f32 %v3080_v24, %v779_v49  ;;  %v744_v62 = vmax.f32 %v3082_v26, %v709_v56  ;;  %v715_v2 = vrot.slane %v672_v59, 1 }
 0x21c   : > { %v785_v5 = vrot.slane %v745_v53, 2  ;;  %v840_v8 = vsel %vm327_vm1, %v837_v38, %v839_v50  ;;  %v713_v9 = vrot.slane %v3101_v61, 1  ;;  %v838_v28 = vsel %vm327_vm1, %v835_v46, %v837_v38 }
 0x21d   : > { %v3118_v14 = vmax.f32 %v813_v34, %v833_v30  ;;  %v3120_v16 = vmax.f32 %v812_v54, %v831_v3  ;;  %v783_v17 = vrot.slane %v744_v62, 2  ;;  %v718_v18 = vsel %vm690_vm6, %v715_v2, %v717_v35 }
 0x21e   : > { %v788_v10 = vsel %vm767_vm7, %v785_v5, %v787_v55  ;;  %v749_v50 = vmax.f32 %v672_v59, %v718_v18  ;;  %v716_v21 = vsel %vm690_vm6, %v713_v9, %v715_v2  ;;  %v712_v55 = vrot.slane %v3116_v13, 1 }
 0x21f   : > { %894 = vrot.lane.b32.xlu0 %v3118_v14, %s2833_s6  ;;  %892 = vrot.lane.b32.xlu1 %v3120_v16, %s2833_s6  ;;  %v816_v22 = vmax.f32 %v745_v53, %v788_v10  ;;  %v786_v35 = vsel %vm767_vm7, %v783_v17, %v785_v5  ;;  %v748_v40 = vmax.f32 %v3101_v61, %v716_v21  ;;  %v844_v27 = vrot.slane %v672_v59, 4 }
 0x220   : > { %v815_v23 = vmax.f32 %v744_v62, %v786_v35  ;;  %v792_v25 = vrot.slane %v749_v50, 2  ;;  %v700_v29 = vsel %vm690_vm6, %v698_v1, %v699_v11  ;;  %v842_v33 = vrot.slane %v3101_v61, 4 }
 0x221   : > { %v3144_v30 = vmax.f32 %v816_v22, %v840_v8  ;;  %v790_v31 = vrot.slane %v748_v40, 2  ;;  %v739_v38 = vmax.f32 %v3037_v51, %v700_v29  ;;  %v768_v49 = vrot.slane %v3073_v20, 2 }
 0x222   : > { %v3148_v45 = vmax.f32 %v815_v23, %v838_v28  ;;  %v795_v52 = vsel %vm767_vm7, %v792_v25, %v794_v63  ;;  %v707_v53 = vsel %vm690_vm6, %v705_v12, %v706_v39  ;;  %v847_v42 = vsel %vm327_vm1, %v844_v27, %v846_v58 }
 0x223   : > { %900 = vrot.lane.b32.xlu0 %v3144_v30, %s2833_s6  ;;  %v819_v1 = vmax.f32 %v749_v50, %v795_v52  ;;  %v793_v11 = vsel %vm767_vm7, %v790_v31, %v792_v25  ;;  %v775_v56 = vrot.slane %v739_v38, 2  ;;  %v743_v59 = vmax.f32 %v3046_v60, %v707_v53 }
 0x224   : > { %898 = vrot.lane.b32.xlu1 %v3148_v45, %s2833_s6  ;;  %v818_v63 = vmax.f32 %v748_v40, %v793_v11  ;;  %v770_v12 = vsel %vm767_vm7, %v768_v49, %v769_v15  ;;  %v714_v39 = vsel %vm690_vm6, %v712_v55, %v713_v9  ;;  %v845_v34 = vsel %vm327_vm1, %v842_v33, %v844_v27 }
 0x225   : > { %v871_v61 = vmax.f32 %v819_v1, %v847_v42  ;;  %v777_v54 = vsel %vm767_vm7, %v775_v56, %v776_v37  ;;  %v782_v62 = vrot.slane %v743_v59, 2  ;;  %v808_v32 = vmax.f32 %v3073_v20, %v770_v12 }
 0x226   : > { %v870_v2 = vmax.f32 %v818_v63, %v845_v34  ;;  %v811_v3 = vmax.f32 %v739_v38, %v777_v54  ;;  %v747_v58 = vmax.f32 %v3116_v13, %v714_v39  ;;  %v820_v4 = vrot.slane %v3031_v43, 4 }
 0x227   : > { %906 = vrot.lane.b32.xlu0 %v871_v61, %s2833_s6  ;;  %v784_v15 = vsel %vm767_vm7, %v782_v62, %v783_v17  ;;  %v829_v24 = vsel %vm327_vm1, %v827_v7, %v828_v19  ;;  %v841_v17 = vrot.slane %v3116_v13, 4  ;;  %v834_v6 = vrot.slane %v3046_v60, 4 }
 0x228   : > { %904 = vrot.lane.b32.xlu1 %v870_v2, %s2833_s6  ;;  %v789_v37 = vrot.slane %v747_v58, 2  ;;  %v863_v5 = vmax.f32 %v811_v3, %v829_v24  ;;  %v822_v20 = vsel %vm327_vm1, %v820_v4, %v821_v57  ;;  %v814_v9 = vmax.f32 %v743_v59, %v784_v15 }
 0x229   : > { %v860_v8 = vmax.f32 %v808_v32, %v822_v20  ;;  %v843_v51 = vsel %vm327_vm1, %v841_v17, %v842_v33  ;;  %v836_v47 = vsel %vm327_vm1, %v834_v6, %v835_v46 }
 0x22a   : > { %v791_v43 = vsel %vm767_vm7, %v789_v37, %v790_v31  ;;  %v866_v7 = vmax.f32 %v814_v9, %v836_v47 }
 0x22b   : > { %890 = vrot.lane.b32.xlu0 %v863_v5, %s2833_s6  ;;  %v817_v18 = vmax.f32 %v747_v58, %v791_v43 }
 0x22c   : > { %884 = vrot.lane.b32.xlu1 %v860_v8, %s2833_s6 }
 0x22d   : > { %v869_v57 = vmax.f32 %v817_v18, %v843_v51 }
 0x22f   : > { %902 = vrot.lane.b32.xlu0 %v869_v57, %s2833_s6 }
 0x230   : > { %896 = vrot.lane.b32.xlu1 %v866_v7, %s2833_s6 }
 0x233   : > { %996 = vrot.lane.b32.xlu0 %v3088_v41, %s2834_s7 }
 0x234   : > { %994 = vrot.lane.b32.xlu1 %v3090_v44, %s2834_s7 }
 0x237   : > { %1002 = vrot.lane.b32.xlu0 %v3118_v14, %s2834_s7 }
 0x238   : > { %1000 = vrot.lane.b32.xlu1 %v3120_v16, %s2834_s7 }
 0x23b   : > { %1008 = vrot.lane.b32.xlu0 %v3144_v30, %s2834_s7 }
 0x23c   : > { %1006 = vrot.lane.b32.xlu1 %v3148_v45, %s2834_s7 }
 0x23f   : > { %1014 = vrot.lane.b32.xlu0 %v871_v61, %s2834_s7 }
 0x240   : > { %1012 = vrot.lane.b32.xlu1 %v870_v2, %s2834_s7 }
 0x243   : > { %998 = vrot.lane.b32.xlu0 %v863_v5, %s2834_s7 }
 0x244   : > { %992 = vrot.lane.b32.xlu1 %v860_v8, %s2834_s7 }
 0x28d   : > { %v887_v60 = vpop.permute.xlu1 %886  ;;  %v889_v19 = vpop.permute.xlu0 %888 }
 0x28e   : > { %v921_v26 = vmax.f32 %v3090_v44, %v887_v60  ;;  %v922_v46 = vmax.f32 %v3088_v41, %v889_v19 }
 0x290   : > { %946 = vrot.lane.b32.xlu1 %v921_v26, %s2835_s8  ;;  %948 = vrot.lane.b32.xlu0 %v922_v46, %s2835_s8 }
 0x291   : > { %v893_v13 = vpop.permute.xlu1 %892  ;;  %v895_v10 = vpop.permute.xlu0 %894 }
 0x292   : > { %v924_v28 = vmax.f32 %v3120_v16, %v893_v13  ;;  %v925_v50 = vmax.f32 %v3118_v14, %v895_v10 }
 0x294   : > { %952 = vrot.lane.b32.xlu1 %v924_v28, %s2835_s8  ;;  %954 = vrot.lane.b32.xlu0 %v925_v50, %s2835_s8 }
 0x295   : > { %v901_v21 = vpop.permute.xlu0 %900 }
 0x296   : > { %v899_v22 = vpop.permute.xlu1 %898  ;;  %v928_v44 = vmax.f32 %v3144_v30, %v901_v21 }
 0x297   : > { %v3225_v41 = vmax.f32 %v3148_v45, %v899_v22 }
 0x298   : > { %960 = vrot.lane.b32.xlu0 %v928_v44, %s2835_s8 }
 0x299   : > { %958 = vrot.lane.b32.xlu1 %v3225_v41, %s2835_s8  ;;  %v907_v35 = vpop.permute.xlu0 %906 }
 0x29a   : > { %v905_v16 = vpop.permute.xlu1 %904  ;;  %v3230_v40 = vmax.f32 %v871_v61, %v907_v35 }
 0x29b   : > { %v3232_v14 = vmax.f32 %v870_v2, %v905_v16 }
 0x29c   : > { %966 = vrot.lane.b32.xlu0 %v3230_v40, %s2835_s8 }
 0x29d   : > { %964 = vrot.lane.b32.xlu1 %v3232_v14, %s2835_s8  ;;  %v891_v55 = vpop.permute.xlu0 %890 }
 0x29e   : > { %v885_v23 = vpop.permute.xlu1 %884  ;;  %v3238_v25 = vmax.f32 %v863_v5, %v891_v55 }
 0x29f   : > { %v3240_v27 = vmax.f32 %v860_v8, %v885_v23 }
 0x2a0   : > { %950 = vrot.lane.b32.xlu0 %v3238_v25, %s2835_s8 }
 0x2a1   : > { %944 = vrot.lane.b32.xlu1 %v3240_v27, %s2835_s8  ;;  %v903_v29 = vpop.permute.xlu0 %902 }
 0x2a2   : > { %v897_v30 = vpop.permute.xlu1 %896  ;;  %v3246_v31 = vmax.f32 %v869_v57, %v903_v29 }
 0x2a3   : > { %v3248_v33 = vmax.f32 %v866_v7, %v897_v30 }
 0x2a4   : > { %962 = vrot.lane.b32.xlu0 %v3246_v31, %s2835_s8 }
 0x2a5   : > { %956 = vrot.lane.b32.xlu1 %v3248_v33, %s2835_s8  ;;  %v997_v45 = vpop.permute.xlu0 %996 }
 0x2a6   : > { %v995_v38 = vpop.permute.xlu1 %994 }
 0x2a8   : > { %1010 = vrot.lane.b32.xlu0 %v869_v57, %s2834_s7 }
 0x2a9   : > { %1004 = vrot.lane.b32.xlu1 %v866_v7, %s2834_s7  ;;  %v1003_v49 = vpop.permute.xlu0 %1002 }
 0x2aa   : > { %v1001_v52 = vpop.permute.xlu1 %1000 }
 0x2ad   : > { %v1009_v1 = vpop.permute.xlu0 %1008 }
 0x2ae   : > { %v1007_v53 = vpop.permute.xlu1 %1006 }
 0x2b1   : > { %v1015_v56 = vpop.permute.xlu0 %1014 }
 0x2b2   : > { %v1013_v11 = vpop.permute.xlu1 %1012 }
 0x2b5   : > { %v999_v42 = vpop.permute.xlu0 %998 }
 0x2b6   : > { %v3256_v59 = vpop.permute.xlu1 %992 }
 0x302   : > { %v947_v63 = vpop.permute.xlu1 %946  ;;  %v949_v12 = vpop.permute.xlu0 %948 }
 0x303   : > { %v981_v39 = vmax.f32 %v921_v26, %v947_v63  ;;  %v982_v61 = vmax.f32 %v922_v46, %v949_v12 }
 0x305   : > { %v3258_v34 = vmax.f32 %v981_v39, %v995_v38  ;;  %v1030_v54 = vmax.f32 %v982_v61, %v997_v45 }
 0x306   : > { %v953_v62 = vpop.permute.xlu1 %952  ;;  %v955_v2 = vpop.permute.xlu0 %954 }
 0x307   : > { %v1394_v3 = vrot.slane %v3258_v34, 1  ;;  %v1396_v32 = vrot.slane %v1030_v54, 1  ;;  %v984_v58 = vmax.f32 %v924_v28, %v953_v62  ;;  %v985_v4 = vmax.f32 %v925_v50, %v955_v2 }
 0x308   : > { %v1055_v5 = vrot.slane %v3258_v34, 4  ;;  %v1057_v9 = vrot.slane %v1030_v54, 4 }
 0x309   : > { %v3261_v15 = vmax.f32 %v984_v58, %v1001_v52  ;;  %v1427_v24 = vmax.f32 %v1030_v54, %v1396_v32  ;;  %v1397_v37 = vsel %vm690_vm6, %v1394_v3, %v1396_v32  ;;  %v1033_v20 = vmax.f32 %v985_v4, %v1003_v49 }
 0x30a   : > { %v961_v8 = vpop.permute.xlu0 %960  ;;  %v3268_v43 = vmax.f32 %v3258_v34, %v1397_v37  ;;  %v3280_v13 = vsel %vm327_vm1, %v1055_v5, %v1057_v9 }
 0x30b   : > { %v959_v17 = vpop.permute.xlu1 %958  ;;  %v988_v6 = vmax.f32 %v928_v44, %v961_v8  ;;  %v1452_v18 = vrot.slane %v1427_v24, 2  ;;  %v1401_v51 = vrot.slane %v1033_v20, 1  ;;  %v1399_v7 = vrot.slane %v3261_v15, 1 }
 0x30c   : > { %v987_v47 = vmax.f32 %v3225_v41, %v959_v17  ;;  %v1450_v57 = vrot.slane %v3268_v43, 2  ;;  %v1060_v35 = vrot.slane %v3261_v15, 4 }
 0x30d   : > { %v3273_v60 = vmax.f32 %v988_v6, %v1009_v1  ;;  %v1483_v19 = vmax.f32 %v1427_v24, %v1452_v18  ;;  %v1430_v28 = vmax.f32 %v1033_v20, %v1401_v51  ;;  %v1402_v38 = vsel %vm690_vm6, %v1399_v7, %v1401_v51 }
 0x30e   : > { %v3275_v26 = vmax.f32 %v987_v47, %v1007_v53  ;;  %v967_v46 = vpop.permute.xlu0 %966  ;;  %v1453_v10 = vsel %vm767_vm7, %v1450_v57, %v1452_v18 }
 0x30f   : > { %v1406_v50 = vrot.slane %v3273_v60, 1  ;;  %v965_v21 = vpop.permute.xlu1 %964  ;;  %v991_v22 = vmax.f32 %v3230_v40, %v967_v46  ;;  %v3287_v44 = vmax.f32 %v1483_v19, %v1057_v9  ;;  %v1482_v41 = vmax.f32 %v3268_v43, %v1453_v10 }
 0x310   : > { %v1404_v16 = vrot.slane %v3275_v26, 1  ;;  %v990_v55 = vmax.f32 %v3232_v14, %v965_v21  ;;  %v1457_v23 = vrot.slane %v1430_v28, 2  ;;  %v1062_v40 = vrot.slane %v1033_v20, 4 }
 0x311   : > { %v3293_v29 = vmax.f32 %v991_v22, %v1015_v56  ;;  %1533 = vrot.lane.b32.xlu0 %v3287_v44, %s2833_s6  ;;  %v3298_v30 = vmax.f32 %v1482_v41, %v3280_v13  ;;  %v3306_v14 = vmax.f32 %v3261_v15, %v1402_v38  ;;  %v1433_v53 = vmax.f32 %v3273_v60, %v1406_v50 }
 0x312   : > { %v3303_v45 = vmax.f32 %v990_v55, %v1013_v11  ;;  %v951_v52 = vpop.permute.xlu0 %950  ;;  %v1486_v49 = vmax.f32 %v1430_v28, %v1457_v23  ;;  %v1407_v11 = vsel %vm690_vm6, %v1404_v16, %v1406_v50  ;;  %v1065_v32 = vrot.slane %v3275_v26, 4 }
 0x313   : > { %v1411_v1 = vrot.slane %v3293_v29, 1  ;;  %v945_v56 = vpop.permute.xlu1 %944  ;;  %v983_v63 = vmax.f32 %v3238_v25, %v951_v52  ;;  %1531 = vrot.lane.b32.xlu1 %v3298_v30, %s2833_s6  ;;  %v1455_v62 = vrot.slane %v3306_v14, 2  ;;  %v1462_v2 = vrot.slane %v1433_v53, 2 }
 0x314   : > { %v1409_v12 = vrot.slane %v3303_v45, 1  ;;  %v980_v39 = vmax.f32 %v3240_v27, %v945_v56  ;;  %v3318_v61 = vmax.f32 %v1486_v49, %v1062_v40  ;;  %v3324_v25 = vmax.f32 %v3275_v26, %v1407_v11 }
 0x315   : > { %v3320_v54 = vmax.f32 %v983_v63, %v999_v42  ;;  %v3333_v27 = vsel %vm327_vm1, %v1060_v35, %v1062_v40  ;;  %v1436_v42 = vmax.f32 %v3293_v29, %v1411_v1  ;;  %v1070_v24 = vrot.slane %v3303_v45, 4 }
 0x316   : > { %v1028_v58 = vmax.f32 %v980_v39, %v3256_v59  ;;  %1539 = vrot.lane.b32.xlu0 %v3318_v61, %s2833_s6  ;;  %v963_v4 = vpop.permute.xlu0 %962  ;;  %v1458_v20 = vsel %vm767_vm7, %v1455_v62, %v1457_v23  ;;  %v1067_v59 = vrot.slane %v3273_v60, 4  ;;  %v1412_v8 = vsel %vm690_vm6, %v1409_v12, %v1411_v1 }
 0x317   : > { %v957_v37 = vpop.permute.xlu1 %956  ;;  %v1398_v17 = vrot.slane %v3320_v54, 1  ;;  %v1485_v6 = vmax.f32 %v3306_v14, %v1458_v20  ;;  %v1072_v18 = vrot.slane %v3293_v29, 4  ;;  %v989_v51 = vmax.f32 %v3246_v31, %v963_v4 }
 0x318   : > { %v1393_v9 = vrot.slane %v1028_v58, 1  ;;  %v1489_v47 = vmax.f32 %v1433_v53, %v1462_v2  ;;  %v1460_v19 = vrot.slane %v3324_v25, 2  ;;  %v1467_v46 = vrot.slane %v1436_v42, 2 }
 0x319   : > { %v986_v10 = vmax.f32 %v3248_v33, %v957_v37  ;;  %v3349_v28 = vmax.f32 %v1485_v6, %v3333_v27  ;;  %v1435_v50 = vmax.f32 %v3303_v45, %v1412_v8  ;;  %v1054_v53 = vrot.slane %v1028_v58, 4 }
 0x31a   : > { %v1011_v60 = vpop.permute.xlu0 %1010  ;;  %v1395_v21 = vsel %vm690_vm6, %v1393_v9, %v1394_v3  ;;  %v3355_v22 = vmax.f32 %v1489_v47, %v1067_v59  ;;  %v1463_v55 = vsel %vm767_vm7, %v1460_v19, %v1462_v2  ;;  %v1492_v23 = vmax.f32 %v1436_v42, %v1467_v46 }
 0x31b   : > { %v1005_v41 = vpop.permute.xlu1 %1004  ;;  %v1037_v31 = vmax.f32 %v989_v51, %v1011_v60  ;;  %1537 = vrot.lane.b32.xlu1 %v3349_v28, %s2833_s6  ;;  %v1488_v29 = vmax.f32 %v3324_v25, %v1463_v55  ;;  %v1465_v40 = vrot.slane %v1435_v50, 2  ;;  %v1425_v38 = vmax.f32 %v1028_v58, %v1395_v21 }
 0x31c   : > { %v1034_v33 = vmax.f32 %v986_v10, %v1005_v41  ;;  %1545 = vrot.lane.b32.xlu0 %v3355_v22, %s2833_s6  ;;  %v3366_v3 = vsel %vm327_vm1, %v1065_v32, %v1067_v59  ;;  %v3368_v49 = vmax.f32 %v1492_v23, %v1072_v18  ;;  %v1400_v25 = vsel %vm690_vm6, %v1398_v17, %v1399_v7 }
 0x31d   : > { %v1408_v52 = vrot.slane %v1037_v31, 1  ;;  %v3371_v56 = vmax.f32 %v1488_v29, %v3366_v3  ;;  %v1468_v63 = vsel %vm767_vm7, %v1465_v40, %v1467_v46  ;;  %v1449_v2 = vrot.slane %v1425_v38, 2 }
 0x31e   : > { %v1403_v1 = vrot.slane %v1034_v33, 1  ;;  %v1491_v39 = vmax.f32 %v1435_v50, %v1468_v63  ;;  %v3386_v58 = vsel %vm327_vm1, %v1070_v24, %v1072_v18  ;;  %v1059_v20 = vrot.slane %v3320_v54, 4 }
 0x31f   : > { %v1410_v11 = vsel %vm690_vm6, %v1408_v52, %v1409_v12  ;;  %1543 = vrot.lane.b32.xlu1 %v3371_v56, %s2833_s6  ;;  %v1428_v12 = vmax.f32 %v3320_v54, %v1400_v25  ;;  %v1064_v17 = vrot.slane %v1034_v33, 4  ;;  %v3399_v18 = vsel %vm327_vm1, %v1054_v53, %v1055_v5 }
 0x320   : > { %v1405_v4 = vsel %vm690_vm6, %v1403_v1, %v1404_v16  ;;  %v1434_v42 = vmax.f32 %v1037_v31, %v1410_v11  ;;  %1551 = vrot.lane.b32.xlu0 %v3368_v49, %s2833_s6  ;;  %v1515_v7 = vmax.f32 %v1491_v39, %v3386_v58  ;;  %v1451_v16 = vsel %vm767_vm7, %v1449_v2, %v1450_v57 }
 0x321   : > { %v1431_v37 = vmax.f32 %v1034_v33, %v1405_v4  ;;  %v1481_v8 = vmax.f32 %v1425_v38, %v1451_v16  ;;  %v1454_v9 = vrot.slane %v1428_v12, 2  ;;  %v1069_v51 = vrot.slane %v1037_v31, 4 }
 0x322   : > { %v1464_v59 = vrot.slane %v1434_v42, 2  ;;  %v3411_v34 = vsel %vm327_vm1, %v1059_v20, %v1060_v35  ;;  %v3417_v14 = vsel %vm327_vm1, %v1064_v17, %v1065_v32 }
 0x323   : > { %v1459_v6 = vrot.slane %v1431_v37, 2  ;;  %1549 = vrot.lane.b32.xlu1 %v1515_v7, %s2833_s6  ;;  %v1505_v47 = vmax.f32 %v1481_v8, %v3399_v18  ;;  %v1456_v43 = vsel %vm767_vm7, %v1454_v9, %v1455_v62 }
 0x324   : > { %v1466_v57 = vsel %vm767_vm7, %v1464_v59, %v1465_v40  ;;  %v1484_v54 = vmax.f32 %v1428_v12, %v1456_v43 }
 0x325   : > { %v1461_v46 = vsel %vm767_vm7, %v1459_v6, %v1460_v19  ;;  %v1490_v10 = vmax.f32 %v1434_v42, %v1466_v57  ;;  %v3424_v19 = vsel %vm327_vm1, %v1069_v51, %v1070_v24 }
 0x326   : > { %v1487_v5 = vmax.f32 %v1431_v37, %v1461_v46  ;;  %v1508_v60 = vmax.f32 %v1484_v54, %v3411_v34 }
 0x327   : > { %1529 = vrot.lane.b32.xlu1 %v1505_v47, %s2833_s6  ;;  %v1514_v15 = vmax.f32 %v1490_v10, %v3424_v19 }
 0x328   : > { %v1511_v62 = vmax.f32 %v1487_v5, %v3417_v14  ;;  %1535 = vrot.lane.b32.xlu0 %v1508_v60, %s2833_s6 }
 0x32b   : > { %1541 = vrot.lane.b32.xlu1 %v1511_v62, %s2833_s6 }
 0x32c   : > { %1547 = vrot.lane.b32.xlu0 %v1514_v15, %s2833_s6 }
 0x32f   : > { %1639 = vrot.lane.b32.xlu1 %v3298_v30, %s2834_s7 }
 0x330   : > { %1641 = vrot.lane.b32.xlu0 %v3287_v44, %s2834_s7 }
 0x333   : > { %1645 = vrot.lane.b32.xlu1 %v3349_v28, %s2834_s7 }
 0x334   : > { %1647 = vrot.lane.b32.xlu0 %v3318_v61, %s2834_s7 }
 0x337   : > { %1651 = vrot.lane.b32.xlu1 %v3371_v56, %s2834_s7 }
 0x338   : > { %1653 = vrot.lane.b32.xlu0 %v3355_v22, %s2834_s7 }
 0x33b   : > { %1657 = vrot.lane.b32.xlu1 %v1515_v7, %s2834_s7 }
 0x33c   : > { %1659 = vrot.lane.b32.xlu0 %v3368_v49, %s2834_s7 }
 0x33f   : > { %1637 = vrot.lane.b32.xlu1 %v1505_v47, %s2834_s7 }
 0x340   : > { %1643 = vrot.lane.b32.xlu0 %v1508_v60, %s2834_s7 }
 0x383   : > { %v1534_v26 = vpop.permute.xlu0 %1533 }
 0x384   : > { %v1567_v35 = vmax.f32 %v3287_v44, %v1534_v26 }
 0x385   : > { %v1532_v45 = vpop.permute.xlu1 %1531 }
 0x386   : > { %v1566_v32 = vmax.f32 %v3298_v30, %v1532_v45  ;;  %1593 = vrot.lane.b32.xlu0 %v1567_v35, %s2835_s8 }
 0x388   : > { %v1540_v24 = vpop.permute.xlu0 %1539  ;;  %1591 = vrot.lane.b32.xlu1 %v1566_v32, %s2835_s8 }
 0x389   : > { %v1570_v50 = vmax.f32 %v3318_v61, %v1540_v24 }
 0x38b   : > { %1599 = vrot.lane.b32.xlu0 %v1570_v50, %s2835_s8 }
 0x38d   : > { %v1538_v21 = vpop.permute.xlu1 %1537 }
 0x38e   : > { %v3454_v41 = vmax.f32 %v3349_v28, %v1538_v21  ;;  %v1546_v31 = vpop.permute.xlu0 %1545 }
 0x38f   : > { %v3457_v55 = vmax.f32 %v3355_v22, %v1546_v31 }
 0x390   : > { %1597 = vrot.lane.b32.xlu1 %v3454_v41, %s2835_s8 }
 0x391   : > { %v1544_v44 = vpop.permute.xlu1 %1543  ;;  %1605 = vrot.lane.b32.xlu0 %v3457_v55, %s2835_s8 }
 0x392   : > { %v3464_v30 = vmax.f32 %v3371_v56, %v1544_v44  ;;  %v1552_v61 = vpop.permute.xlu0 %1551 }
 0x393   : > { %v3467_v23 = vmax.f32 %v3368_v49, %v1552_v61 }
 0x394   : > { %1603 = vrot.lane.b32.xlu1 %v3464_v30, %s2835_s8 }
 0x395   : > { %v1550_v28 = vpop.permute.xlu1 %1549  ;;  %1611 = vrot.lane.b32.xlu0 %v3467_v23, %s2835_s8 }
 0x396   : > { %v3473_v22 = vmax.f32 %v1515_v7, %v1550_v28 }
 0x398   : > { %1609 = vrot.lane.b32.xlu1 %v3473_v22, %s2835_s8 }
 0x399   : > { %v1530_v33 = vpop.permute.xlu1 %1529 }
 0x39a   : > { %v3477_v29 = vmax.f32 %v1505_v47, %v1530_v33  ;;  %v1536_v40 = vpop.permute.xlu0 %1535 }
 0x39b   : > { %v3479_v38 = vmax.f32 %v1508_v60, %v1536_v40 }
 0x39c   : > { %1589 = vrot.lane.b32.xlu1 %v3477_v29, %s2835_s8 }
 0x39d   : > { %1595 = vrot.lane.b32.xlu0 %v3479_v38, %s2835_s8  ;;  %v1542_v52 = vpop.permute.xlu1 %1541 }
 0x39e   : > { %v3485_v49 = vmax.f32 %v1511_v62, %v1542_v52  ;;  %v1548_v53 = vpop.permute.xlu0 %1547 }
 0x39f   : > { %v3487_v1 = vmax.f32 %v1514_v15, %v1548_v53 }
 0x3a0   : > { %1601 = vrot.lane.b32.xlu1 %v3485_v49, %s2835_s8 }
 0x3a1   : > { %1607 = vrot.lane.b32.xlu0 %v3487_v1, %s2835_s8  ;;  %v1640_v63 = vpop.permute.xlu1 %1639 }
 0x3a2   : > { %v1642_v56 = vpop.permute.xlu0 %1641 }
 0x3a4   : > { %1649 = vrot.lane.b32.xlu1 %v1511_v62, %s2834_s7 }
 0x3a5   : > { %1655 = vrot.lane.b32.xlu0 %v1514_v15, %s2834_s7  ;;  %v1646_v39 = vpop.permute.xlu1 %1645 }
 0x3a6   : > { %v1648_v11 = vpop.permute.xlu0 %1647 }
 0x3a8   : > { %1076 = vrot.lane.b32.xlu1 %v3280_v13, %s2834_s7 }
 0x3a9   : > { %1080 = vrot.lane.b32.xlu0 %v3333_v27, %s2834_s7  ;;  %v1652_v25 = vpop.permute.xlu1 %1651 }
 0x3aa   : > { %v1654_v2 = vpop.permute.xlu0 %1653 }
 0x3ac   : > { %1084 = vrot.lane.b32.xlu1 %v3366_v3, %s2834_s7 }
 0x3ad   : > { %1088 = vrot.lane.b32.xlu0 %v3386_v58, %s2834_s7  ;;  %v1658_v42 = vpop.permute.xlu1 %1657 }
 0x3ae   : > { %v1660_v4 = vpop.permute.xlu0 %1659 }
 0x3b1   : > { %v3505_v13 = vpop.permute.xlu1 %1637 }
 0x3b2   : > { %v3503_v12 = vpop.permute.xlu0 %1643 }
 0x3f8   : > { %v1594_v37 = vpop.permute.xlu0 %1593 }
 0x3f9   : > { %v1627_v27 = vmax.f32 %v1567_v35, %v1594_v37 }
 0x3fa   : > { %v1592_v7 = vpop.permute.xlu1 %1591 }
 0x3fb   : > { %v3507_v16 = vmax.f32 %v1627_v27, %v1642_v56  ;;  %v1626_v3 = vmax.f32 %v1566_v32, %v1592_v7 }
 0x3fd   : > { %v2034_v58 = vrot.slane %v3507_v16, 1  ;;  %v3510_v20 = vmax.f32 %v1626_v3, %v1640_v63  ;;  %v1600_v59 = vpop.permute.xlu0 %1599  ;;  %v2126_v15 = vrot.slane %v3507_v16, 4 }
 0x3fe   : > { %v1630_v8 = vmax.f32 %v1570_v50, %v1600_v59 }
 0x3ff   : > { %v2032_v9 = vrot.slane %v3510_v20, 1  ;;  %v2065_v17 = vmax.f32 %v3507_v16, %v2034_v58  ;;  %v2124_v46 = vrot.slane %v3510_v20, 4 }
 0x400   : > { %v3517_v51 = vmax.f32 %v1630_v8, %v1648_v11 }
 0x401   : > { %v2035_v6 = vsel %vm690_vm6, %v2032_v9, %v2034_v58  ;;  %v2090_v57 = vrot.slane %v2065_v17, 2  ;;  %v2127_v31 = vsel %vm327_vm1, %v2124_v46, %v2126_v15 }
 0x402   : > { %v3520_v47 = vmax.f32 %v3510_v20, %v2035_v6  ;;  %v1598_v43 = vpop.permute.xlu1 %1597  ;;  %v2039_v60 = vrot.slane %v3517_v51, 1  ;;  %v2131_v63 = vrot.slane %v3517_v51, 4 }
 0x403   : > { %v1629_v10 = vmax.f32 %v3454_v41, %v1598_v43  ;;  %v1606_v5 = vpop.permute.xlu0 %1605 }
 0x404   : > { %v2088_v54 = vrot.slane %v3520_v47, 2  ;;  %v1633_v62 = vmax.f32 %v3457_v55, %v1606_v5  ;;  %v2068_v55 = vmax.f32 %v3517_v51, %v2039_v60 }
 0x405   : > { %v3528_v26 = vmax.f32 %v1629_v10, %v1646_v39 }
 0x406   : > { %v2091_v35 = vsel %vm767_vm7, %v2088_v54, %v2090_v57  ;;  %v3533_v45 = vmax.f32 %v1633_v62, %v1654_v2  ;;  %v1604_v32 = vpop.permute.xlu1 %1603  ;;  %v2095_v39 = vrot.slane %v2068_v55, 2 }
 0x407   : > { %v2116_v24 = vmax.f32 %v3520_v47, %v2091_v35  ;;  %v2037_v50 = vrot.slane %v3528_v26, 1  ;;  %v1632_v21 = vmax.f32 %v3464_v30, %v1604_v32  ;;  %v1612_v41 = vpop.permute.xlu0 %1611  ;;  %v2129_v30 = vrot.slane %v3528_v26, 4 }
 0x408   : > { %v2044_v44 = vrot.slane %v3533_v45, 1  ;;  %v1636_v61 = vmax.f32 %v3467_v23, %v1612_v41 }
 0x409   : > { %v3544_v28 = vmax.f32 %v2116_v24, %v2127_v31  ;;  %v2040_v33 = vsel %vm690_vm6, %v2037_v50, %v2039_v60  ;;  %v3547_v40 = vmax.f32 %v1632_v21, %v1652_v25  ;;  %v2132_v58 = vsel %vm327_vm1, %v2129_v30, %v2131_v63 }
 0x40a   : > { %v3550_v52 = vmax.f32 %v3528_v26, %v2040_v33  ;;  %v3553_v53 = vmax.f32 %v1636_v61, %v1660_v4  ;;  %v1610_v56 = vpop.permute.xlu1 %1609  ;;  %v2071_v25 = vmax.f32 %v3533_v45, %v2044_v44  ;;  %v2136_v60 = vrot.slane %v3533_v45, 4 }
 0x40b   : > { %2169 = vrot.lane.b32.xlu1 %v3544_v28, %s2833_s6  ;;  %v2042_v23 = vrot.slane %v3547_v40, 1  ;;  %v1635_v11 = vmax.f32 %v3473_v22, %v1610_v56  ;;  %v2134_v59 = vrot.slane %v3547_v40, 4 }
 0x40c   : > { %v2093_v2 = vrot.slane %v3550_v52, 2  ;;  %v2049_v37 = vrot.slane %v3553_v53, 1  ;;  %v2100_v43 = vrot.slane %v2071_v25, 2  ;;  %v2141_v33 = vrot.slane %v3553_v53, 4 }
 0x40d   : > { %v2045_v4 = vsel %vm690_vm6, %v2042_v23, %v2044_v44  ;;  %v3566_v27 = vmax.f32 %v1635_v11, %v1658_v42  ;;  %v2137_v31 = vsel %vm327_vm1, %v2134_v59, %v2136_v60 }
 0x40e   : > { %v3569_v7 = vmax.f32 %v3547_v40, %v2045_v4  ;;  %v1590_v3 = vpop.permute.xlu1 %1589  ;;  %v2096_v22 = vsel %vm767_vm7, %v2093_v2, %v2095_v39  ;;  %v2074_v10 = vmax.f32 %v3553_v53, %v2049_v37 }
 0x40f   : > { %v2047_v8 = vrot.slane %v3566_v27, 1  ;;  %v1625_v17 = vmax.f32 %v3477_v29, %v1590_v3  ;;  %v1596_v42 = vpop.permute.xlu0 %1595  ;;  %v2118_v6 = vmax.f32 %v3550_v52, %v2096_v22  ;;  %v2139_v44 = vrot.slane %v3566_v27, 4 }
 0x410   : > { %v2098_v57 = vrot.slane %v3569_v7, 2  ;;  %v1628_v5 = vmax.f32 %v3479_v38, %v1596_v42  ;;  %v2105_v55 = vrot.slane %v2074_v10, 2 }
 0x411   : > { %v2050_v62 = vsel %vm690_vm6, %v2047_v8, %v2049_v37  ;;  %v3587_v15 = vmax.f32 %v1625_v17, %v3505_v13  ;;  %v3589_v35 = vmax.f32 %v2118_v6, %v2132_v58 }
 0x412   : > { %v3592_v29 = vmax.f32 %v3566_v27, %v2050_v62  ;;  %v3595_v32 = vmax.f32 %v1628_v5, %v3503_v12  ;;  %v1602_v24 = vpop.permute.xlu1 %1601  ;;  %v2101_v38 = vsel %vm767_vm7, %v2098_v57, %v2100_v43 }
 0x413   : > { %v2031_v21 = vrot.slane %v3587_v15, 1  ;;  %2173 = vrot.lane.b32.xlu0 %v3589_v35, %s2833_s6  ;;  %v1608_v13 = vpop.permute.xlu0 %1607  ;;  %v2120_v41 = vmax.f32 %v3569_v7, %v2101_v38  ;;  %v1631_v63 = vmax.f32 %v3485_v49, %v1602_v24  ;;  %v2123_v42 = vrot.slane %v3587_v15, 4 }
 0x414   : > { %v2103_v12 = vrot.slane %v3592_v29, 2  ;;  %v2036_v61 = vrot.slane %v3595_v32, 1  ;;  %v1634_v37 = vmax.f32 %v3487_v1, %v1608_v13  ;;  %v2142_v1 = vsel %vm327_vm1, %v2139_v44, %v2141_v33 }
 0x415   : > { %v2033_v56 = vsel %vm690_vm6, %v2031_v21, %v2032_v9  ;;  %v3615_v11 = vmax.f32 %v2120_v41, %v2137_v31  ;;  %v2128_v43 = vrot.slane %v3595_v32, 4  ;;  %v2125_v47 = vsel %vm327_vm1, %v2123_v42, %v2124_v46 }
 0x416   : > { %v2063_v39 = vmax.f32 %v3587_v15, %v2033_v56  ;;  %v2038_v25 = vsel %vm690_vm6, %v2036_v61, %v2037_v50  ;;  %v1650_v4 = vpop.permute.xlu1 %1649  ;;  %v2106_v3 = vsel %vm767_vm7, %v2103_v12, %v2105_v55 }
 0x417   : > { %v2066_v22 = vmax.f32 %v3595_v32, %v2038_v25  ;;  %2177 = vrot.lane.b32.xlu1 %v3615_v11, %s2833_s6  ;;  %v3624_v58 = vmax.f32 %v1631_v63, %v1650_v4  ;;  %v1656_v9 = vpop.permute.xlu0 %1655  ;;  %v2122_v49 = vmax.f32 %v3592_v29, %v2106_v3  ;;  %v2130_v61 = vsel %vm327_vm1, %v2128_v43, %v2129_v30 }
 0x418   : > { %v2087_v17 = vrot.slane %v2063_v39, 2  ;;  %v3628_v6 = vmax.f32 %v1634_v37, %v1656_v9 }
 0x419   : > { %v2092_v50 = vrot.slane %v2066_v22, 2  ;;  %v2041_v10 = vrot.slane %v3624_v58, 1  ;;  %v3635_v5 = vmax.f32 %v2122_v49, %v2142_v1 }
 0x41a   : > { %v2046_v60 = vrot.slane %v3628_v6, 1  ;;  %v1077_v62 = vpop.permute.xlu1 %1076  ;;  %v2089_v29 = vsel %vm767_vm7, %v2087_v17, %v2088_v54  ;;  %v2138_v25 = vrot.slane %v3628_v6, 4 }
 0x41b   : > { %v2043_v24 = vsel %vm690_vm6, %v2041_v10, %v2042_v23  ;;  %2181 = vrot.lane.b32.xlu0 %v3635_v5, %s2833_s6  ;;  %v1081_v38 = vpop.permute.xlu0 %1080  ;;  %v2115_v21 = vmax.f32 %v2063_v39, %v2089_v29  ;;  %v2094_v13 = vsel %vm767_vm7, %v2092_v50, %v2093_v2  ;;  %v2133_v2 = vrot.slane %v3624_v58, 4 }
 0x41c   : > { %v2069_v41 = vmax.f32 %v3624_v58, %v2043_v24  ;;  %v2048_v31 = vsel %vm690_vm6, %v2046_v60, %v2047_v8  ;;  %v2117_v54 = vmax.f32 %v2066_v22, %v2094_v13  ;;  %v2140_v10 = vsel %vm327_vm1, %v2138_v25, %v2139_v44 }
 0x41d   : > { %v2072_v23 = vmax.f32 %v3628_v6, %v2048_v31  ;;  %v3655_v55 = vmax.f32 %v2115_v21, %v2125_v47  ;;  %v2135_v7 = vsel %vm327_vm1, %v2133_v2, %v2134_v59  ;;  %v1700_v59 = vrot.slane %v3510_v20, 2 }
 0x41e   : > { %v2097_v52 = vrot.slane %v2069_v41, 2  ;;  %v3661_v33 = vmax.f32 %v2117_v54, %v2130_v61  ;;  %v1085_v56 = vpop.permute.xlu1 %1084  ;;  %v1702_v44 = vrot.slane %v3507_v16, 2  ;;  %v1707_v24 = vrot.slane %v3517_v51, 2 }
 0x41f   : > { %v2102_v8 = vrot.slane %v2072_v23, 2  ;;  %2167 = vrot.lane.b32.xlu1 %v3655_v55, %s2833_s6  ;;  %v1166_v46 = vcombine.low %v1077_v62, %v1085_v56  ;;  %v1167_v63 = vcombine.high %v1077_v62, %v1085_v56  ;;  %v1089_v39 = vpop.permute.xlu0 %1088  ;;  %v1705_v62 = vrot.slane %v3528_v26, 2 }
 0x420   : > { %2171 = vrot.lane.b32.xlu0 %v3661_v33, %s2833_s6  ;;  %v1182_v37 = vcombine.low %v1081_v38, %v1089_v39  ;;  %v1183_v30 = vcombine.high %v1081_v38, %v1089_v39  ;;  %v2099_v4 = vsel %vm767_vm7, %v2097_v52, %v2098_v57  ;;  %v1703_v29 = vsel %vm767_vm7, %v1700_v59, %v1702_v44 }
 0x421   : > { %v3672_v3 = vrot.slane %v1166_v46, %v2973_v36  ;;  %v3675_v22 = vrot.slane %v1167_v63, %v2973_v36  ;;  %v2119_v9 = vmax.f32 %v2069_v41, %v2099_v4  ;;  %v2104_v49 = vsel %vm767_vm7, %v2102_v8, %v2103_v12 }
 0x422   : > { %v3679_v17 = vrot.slane %v1182_v37, %v2973_v36  ;;  %v3682_v42 = vrot.slane %v1183_v30, %v2973_v36  ;;  %v2121_v57 = vmax.f32 %v2072_v23, %v2104_v49  ;;  %v1712_v20 = vrot.slane %v3533_v45, 2 }
 0x423   : > { %v2155_v1 = vmax.f32 %v2119_v9, %v2135_v7  ;;  %v1699_v26 = vrot.slane %v3587_v15, 2  ;;  %v1714_v15 = vrot.slane %v3628_v6, 2 }
 0x424   : > { %v1199_v50 = vcombine.high %v3672_v3, %v3679_v17  ;;  %v1214_v43 = vcombine.low %v3675_v22, %v3682_v42  ;;  %v1215_v12 = vcombine.high %v3675_v22, %v3682_v42  ;;  %v3697_v60 = vmax.f32 %v2121_v57, %v2140_v10 }
 0x425   : > { %2175 = vrot.lane.b32.xlu1 %v2155_v1, %s2833_s6  ;;  %v1198_v38 = vcombine.low %v3672_v3, %v3679_v17  ;;  %v1701_v45 = vsel %vm767_vm7, %v1699_v26, %v1700_v59 }
 0x426   : > { %2179 = vrot.lane.b32.xlu0 %v3697_v60, %s2833_s6 }
 0x427   : > { %v3735_v21 = vrot.slane %v1198_v38, %v2980_v48 }
 0x429   : > { %1074 = vrot.lane.b32.xlu1 %v3399_v18, %s2834_s7  ;;  %v1710_v18 = vrot.slane %v3547_v40, 2  ;;  %v1704_v40 = vrot.slane %v3595_v32, 2 }
 0x42a   : > { %1078 = vrot.lane.b32.xlu0 %v3411_v34, %s2834_s7  ;;  %v1708_v34 = vsel %vm767_vm7, %v1705_v62, %v1707_v24 }
 0x42b   : > { %v1713_v16 = vsel %vm767_vm7, %v1710_v18, %v1712_v20 }
 0x42d   : > { %1082 = vrot.lane.b32.xlu1 %v3417_v14, %s2834_s7  ;;  %v1715_v14 = vrot.slane %v3566_v27, 2  ;;  %v1709_v27 = vrot.slane %v3624_v58, 2  ;;  %v1230_v58 = vcombine.high %v3735_v21, %v2820_v0 }
 0x42e   : > { %1086 = vrot.lane.b32.xlu0 %v3424_v19, %s2834_s7  ;;  %v1717_v19 = vrot.slane %v3553_v53, 2  ;;  %v1706_v53 = vsel %vm767_vm7, %v1704_v40, %v1705_v62 }
 0x42f   : > { %v1711_v32 = vsel %vm767_vm7, %v1709_v27, %v1710_v18  ;;  %v1716_v13 = vsel %vm767_vm7, %v1714_v15, %v1715_v14 }
 0x430   : > { %v1718_v51 = vsel %vm767_vm7, %v1715_v14, %v1717_v19 }
 0x431   : > { %1721 = vrot.lane.b32.xlu1 %v1703_v29, %s2835_s8 }
 0x432   : > { %1725 = vrot.lane.b32.xlu0 %v1708_v34, %s2835_s8 }
 0x435   : > { %1729 = vrot.lane.b32.xlu1 %v1713_v16, %s2835_s8 }
 0x436   : > { %1733 = vrot.lane.b32.xlu0 %v1718_v51, %s2835_s8 }
 0x439   : > { %1719 = vrot.lane.b32.xlu1 %v1701_v45, %s2835_s8 }
 0x43a   : > { %1723 = vrot.lane.b32.xlu0 %v1706_v53, %s2835_s8 }
 0x43d   : > { %1727 = vrot.lane.b32.xlu1 %v1711_v32, %s2835_s8 }
 0x43e   : > { %1731 = vrot.lane.b32.xlu0 %v1716_v13, %s2835_s8 }
 0x441   : > { %1263 = vrot.lane.b32.xlu1 %v1230_v58, %s2828_s26 }
 0x445   : > { %2241 = vrot.lane.b32.xlu1 %v3544_v28, %s2834_s7 }
 0x449   : > { %2249 = vrot.lane.b32.xlu1 %v3615_v11, %s2834_s7 }
 0x44d   : > { %2239 = vrot.lane.b32.xlu1 %v3655_v55, %s2834_s7 }
 0x451   : > { %2247 = vrot.lane.b32.xlu1 %v2155_v1, %s2834_s7 }
 0x47d   : > { %v2170_v6 = vpop.permute.xlu1 %2169 }
 0x47e   : > { %v3753_v41 = vmax.f32 %v3544_v28, %v2170_v6 }
 0x480   : > { %2209 = vrot.lane.b32.xlu1 %v3753_v41, %s2835_s8 }
 0x485   : > { %v2174_v54 = vpop.permute.xlu0 %2173 }
 0x486   : > { %v3821_v6 = vmax.f32 %v3589_v35, %v2174_v54 }
 0x489   : > { %v2178_v31 = vpop.permute.xlu1 %2177 }
 0x48a   : > { %v3758_v47 = vmax.f32 %v3615_v11, %v2178_v31 }
 0x48c   : > { %2217 = vrot.lane.b32.xlu1 %v3758_v47, %s2835_s8 }
 0x48d   : > { %v3762_v23 = vpop.permute.xlu0 %2181 }
 0x491   : > { %v2168_v61 = vpop.permute.xlu1 %2167 }
 0x492   : > { %v3765_v52 = vmax.f32 %v3655_v55, %v2168_v61  ;;  %v3769_v28 = vpop.permute.xlu0 %2171  ;;  %v1213_v55 = vrot.slane %v1199_v50, %v2980_v48 }
 0x494   : > { %2207 = vrot.lane.b32.xlu1 %v3765_v52, %s2835_s8  ;;  %v1231_v25 = vcombine.high %v1213_v55, %v2820_v0 }
 0x497   : > { %v2176_v2 = vpop.permute.xlu1 %2175 }
 0x498   : > { %v3771_v56 = vmax.f32 %v2155_v1, %v2176_v2  ;;  %v3773_v11 = vpop.permute.xlu0 %2179 }
 0x49a   : > { %2215 = vrot.lane.b32.xlu1 %v3771_v56, %s2835_s8 }
 0x49b   : > { %v1075_v8 = vpop.permute.xlu1 %1074 }
 0x49c   : > { %v1079_v46 = vpop.permute.xlu0 %1078 }
 0x49e   : > { %1267 = vrot.lane.b32.xlu1 %v1213_v55, %s2827_s25 }
 0x49f   : > { %v1083_v63 = vpop.permute.xlu1 %1082 }
 0x4a0   : > { %v1098_v39 = vcombine.low %v1075_v8, %v1083_v63  ;;  %v1087_v37 = vpop.permute.xlu0 %1086  ;;  %v1099_v20 = vcombine.high %v1075_v8, %v1083_v63  ;;  %v3835_v8 = vmax.f32 %v3635_v5, %v3762_v23 }
 0x4a1   : > { %v1114_v4 = vcombine.low %v1079_v46, %v1087_v37  ;;  %v1115_v14 = vcombine.high %v1079_v46, %v1087_v37 }
 0x4a2   : > { %v1106_v30 = vrot.slane %v1098_v39, %v2973_v36  ;;  %1271 = vrot.lane.b32.xlu1 %v1231_v25, %s2826_s23  ;;  %v3802_v51 = vrot.slane %v1099_v20, %v2973_v36  ;;  %v1229_v39 = vrot.slane %v1215_v12, %v2980_v48  ;;  %v3860_v12 = vmax.f32 %v3697_v60, %v3773_v11 }
 0x4a3   : > { %v1722_v9 = vpop.permute.xlu1 %1721  ;;  %v1122_v49 = vrot.slane %v1114_v4, %v2973_v36  ;;  %v3805_v40 = vrot.slane %v1115_v14, %v2973_v36 }
 0x4a4   : > { %v1726_v7 = vpop.permute.xlu0 %1725 }
 0x4a5   : > { %v1130_v57 = vcombine.low %v1106_v30, %v1122_v49  ;;  %v1131_v3 = vcombine.high %v1106_v30, %v1122_v49  ;;  %v1146_v27 = vcombine.low %v3802_v51, %v3805_v40 }
 0x4a7   : > { %v1730_v17 = vpop.permute.xlu1 %1729  ;;  %v3787_v1 = vrot.slane %v1130_v57, %v2980_v48  ;;  %v1145_v50 = vrot.slane %v1131_v3, %v2980_v48  ;;  %v1154_v58 = vrot.slane %v1146_v27, %v2980_v48 }
 0x4a8   : > { %v1734_v10 = vpop.permute.xlu0 %1733  ;;  %v1812_v15 = vcombine.high %v1722_v9, %v1730_v17  ;;  %v1811_v55 = vcombine.low %v1722_v9, %v1730_v17  ;;  %v1233_v9 = vcombine.high %v1229_v39, %v2820_v0 }
 0x4a9   : > { %v1163_v59 = vcombine.high %v1145_v50, %v2820_v0  ;;  %v1162_v44 = vcombine.high %v3787_v1, %v2820_v0  ;;  %v1828_v32 = vcombine.high %v1726_v7, %v1734_v10  ;;  %v1164_v42 = vcombine.high %v1154_v58, %v2820_v0 }
 0x4aa   : > { %v3827_v31 = vrot.slane %v1812_v15, %v2973_v36  ;;  %v1819_v23 = vrot.slane %v1811_v55, %v2973_v36 }
 0x4ab   : > { %v1720_v62 = vpop.permute.xlu1 %1719  ;;  %1243 = vrot.lane.b32.xlu1 %v1163_v59, %s2826_s23  ;;  %1235 = vrot.lane.b32.xlu0 %v1162_v44, %s2828_s26  ;;  %v3830_v61 = vrot.slane %v1828_v32, %v2973_v36 }
 0x4ac   : > { %v1724_v29 = vpop.permute.xlu0 %1723 }
 0x4ad   : > { %v1859_v54 = vcombine.low %v3827_v31, %v3830_v61 }
 0x4af   : > { %v1728_v24 = vpop.permute.xlu1 %1727  ;;  %2245 = vrot.lane.b32.xlu0 %v3589_v35, %s2834_s7  ;;  %v1827_v35 = vcombine.low %v1726_v7, %v1734_v10  ;;  %v1867_v4 = vrot.slane %v1859_v54, %v2980_v48 }
 0x4b0   : > { %v1743_v18 = vcombine.low %v1720_v62, %v1728_v24  ;;  %v1732_v34 = vpop.permute.xlu0 %1731  ;;  %v1744_v46 = vcombine.high %v1720_v62, %v1728_v24 }
 0x4b1   : > { %v1759_v19 = vcombine.low %v1724_v29, %v1732_v34  ;;  %v1760_v63 = vcombine.high %v1724_v29, %v1732_v34  ;;  %v1835_v25 = vrot.slane %v1827_v35, %v2973_v36  ;;  %v1860_v34 = vcombine.high %v3827_v31, %v3830_v61 }
 0x4b2   : > { %v1751_v16 = vrot.slane %v1743_v18, %v2973_v36  ;;  %v1758_v37 = vrot.slane %v1744_v46, %v2973_v36  ;;  %v322_v18 = vld [vmem:[%s4108_s3] sm:$0xff] }
 0x4b3   : > { %v1767_v26 = vrot.slane %v1759_v19, %v2973_v36  ;;  %2253 = vrot.lane.b32.xlu0 %v3635_v5, %s2834_s7  ;;  %v3848_v5 = vmax.f32 %v3661_v33, %v3769_v28  ;;  %v1774_v30 = vrot.slane %v1760_v63, %v2973_v36  ;;  %v1844_v17 = vcombine.high %v1819_v23, %v1835_v25  ;;  %v3912_v14 = vpop.permute.xlu1 %1263 }
 0x4b4   : > { %2663 = vmatmul.mubr.msk.f32.vlgmr.msra.gmra.mxu1 %vm323_vm8, %v322_v18 }
 0x4b5   : > { %v1775_v38 = vcombine.low %v1751_v16, %v1767_v26  ;;  %v1776_v13 = vcombine.high %v1751_v16, %v1767_v26  ;;  %v1791_v28 = vcombine.low %v1758_v37, %v1774_v30  ;;  %v1792_v57 = vcombine.high %v1758_v37, %v1774_v30  ;;  %2022 = vmatprep.mubr.f32.mxu1 %v2820_v0 }
 0x4b6   : > { %v1858_v59 = vrot.slane %v1844_v17, %v2980_v48  ;;  %v1874_v16 = vrot.slane %v1860_v34, %v2980_v48 }
 0x4b7   : > { %v3808_v45 = vrot.slane %v1775_v38, %v2980_v48  ;;  %2243 = vrot.lane.b32.xlu0 %v3661_v33, %s2834_s7  ;;  %v1790_v2 = vrot.slane %v1776_v13, %v2980_v48  ;;  %v1843_v33 = vcombine.low %v1819_v23, %v1835_v25  ;;  %v1799_v7 = vrot.slane %v1791_v28, %v2980_v48  ;;  %v2242_v26 = vpop.permute.xlu1 %2241 }
 0x4b8   : > { %v1806_v10 = vrot.slane %v1792_v57, %v2980_v48  ;;  %v1876_v22 = vcombine.high %v1858_v59, %v2820_v0  ;;  %v1878_v19 = vcombine.high %v1874_v16, %v2820_v0 }
 0x4b9   : > { %v1807_v53 = vcombine.high %v3808_v45, %v2820_v0  ;;  %v3867_v49 = vrot.slane %v1843_v33, %v2980_v48  ;;  %v1809_v3 = vcombine.high %v1799_v7, %v2820_v0  ;;  %v1808_v29 = vcombine.high %v1790_v2, %v2820_v0 }
 0x4ba   : > { %v1810_v44 = vcombine.high %v1806_v10, %v2820_v0 }
 0x4bb   : > { %1880 = vrot.lane.b32.xlu1 %v1807_v53, %s2828_s26  ;;  %2251 = vrot.lane.b32.xlu0 %v3697_v60, %s2834_s7  ;;  %v1877_v60 = vcombine.high %v1867_v4, %v2820_v0  ;;  %v1875_v11 = vcombine.high %v3867_v49, %v2820_v0 }
 0x4bf   : > { %1247 = vrot.lane.b32.xlu1 %v1154_v58, %s2825_s17  ;;  %2213 = vrot.lane.b32.xlu0 %v3821_v6, %s2835_s8 }
 0x4c3   : > { %1884 = vrot.lane.b32.xlu1 %v1790_v2, %s2827_s25  ;;  %2221 = vrot.lane.b32.xlu0 %v3835_v8, %s2835_s8 }
 0x4c7   : > { %1283 = vrot.lane.b32.xlu1 %v1229_v39, %s2822_s14  ;;  %2211 = vrot.lane.b32.xlu0 %v3848_v5, %s2835_s8 }
 0x4cb   : > { %1920 = vrot.lane.b32.xlu1 %v1867_v4, %s2825_s17  ;;  %2219 = vrot.lane.b32.xlu0 %v3860_v12, %s2835_s8 }
 0x4cf   : > { %1287 = vrot.lane.b32.xlu1 %v1233_v9, %s2823_s15  ;;  %1239 = vrot.lane.b32.xlu0 %v1145_v50, %s2827_s25  ;;  %v1222_v50 = vrot.slane %v1214_v43, %v2980_v48  ;;  %v1147_v43 = vcombine.high %v3802_v51, %v3805_v40  ;;  %v2250_v51 = vpop.permute.xlu1 %2249 }
 0x4d1   : > { %v1232_v62 = vcombine.high %v1222_v50, %v2820_v0  ;;  %v1161_v24 = vrot.slane %v1147_v43, %v2980_v48 }
 0x4d3   : > { %1924 = vrot.lane.b32.xlu1 %v1877_v60, %s2824_s16  ;;  %1908 = vrot.lane.b32.xlu0 %v1875_v11, %s2828_s26  ;;  %v1165_v20 = vcombine.high %v1161_v24, %v2820_v0  ;;  %v2240_v40 = vpop.permute.xlu1 %2239 }
 0x4d7   : > { %1896 = vrot.lane.b32.xlu1 %v1809_v3, %s2824_s16  ;;  %1275 = vrot.lane.b32.xlu0 %v1222_v50, %s2825_s17  ;;  %v2248_v38 = vpop.permute.xlu1 %2247 }
 0x4db   : > { %1900 = vrot.lane.b32.xlu1 %v1806_v10, %s2822_s14  ;;  %1912 = vrot.lane.b32.xlu0 %v1858_v59, %s2827_s25 }
 0x4df   : > { %1904 = vrot.lane.b32.xlu1 %v1810_v44, %s2823_s15  ;;  %1279 = vrot.lane.b32.xlu0 %v1232_v62, %s2824_s16 }
 0x4e3   : > { %1916 = vrot.lane.b32.xlu0 %v1876_v22, %s2826_s23 }
 0x4e7   : > { %1251 = vrot.lane.b32.xlu0 %v1164_v42, %s2824_s16 }
 0x4eb   : > { %1888 = vrot.lane.b32.xlu0 %v1808_v29, %s2826_s23 }
 0x4ef   : > { %1255 = vrot.lane.b32.xlu0 %v1161_v24, %s2822_s14 }
 0x4f2   : > { %v2210_v27 = vpop.permute.xlu1 %2209 }
 0x4f3   : > { %1892 = vrot.lane.b32.xlu0 %v1799_v7, %s2825_s17  ;;  %v2232_v39 = vmax.f32 %v3753_v41, %v2210_v27 }
 0x4f5   : > { %v2264_v4 = vmax.f32 %v2232_v39, %v2242_v26 }
 0x4f7   : > { %1259 = vrot.lane.b32.xlu0 %v1165_v20, %s2823_s15 }
 0x4fb   : > { %1928 = vrot.lane.b32.xlu0 %v1874_v16, %s2822_s14 }
 0x4fe   : > { %v2218_v53 = vpop.permute.xlu1 %2217 }
 0x4ff   : > { %1932 = vrot.lane.b32.xlu0 %v1878_v19, %s2823_s15  ;;  %v2236_v54 = vmax.f32 %v3758_v47, %v2218_v53 }
 0x501   : > { %v2268_v23 = vmax.f32 %v2236_v54, %v2250_v51 }
 0x503   : > { %v2341_v28 = vcombine.low %v2264_v4, %v2268_v23  ;;  %v2342_v18 = vcombine.high %v2264_v4, %v2268_v23  ;;  %v1304_v4 = vsel %vm1290_vm9, %v3735_v21, %v3912_v14 }
 0x505   : > { %v2349_v41 = vrot.slane %v2341_v28, %v2973_v36 }
 0x506   : > { %v2208_v15 = vpop.permute.xlu1 %2207 }
 0x507   : > { %v2231_v57 = vmax.f32 %v3765_v52, %v2208_v15 }
 0x509   : > { %v2263_v59 = vmax.f32 %v2231_v57, %v2240_v40  ;;  %v2356_v40 = vrot.slane %v2342_v18, %v2973_v36 }
 0x50c   : > { %v2216_v13 = vpop.permute.xlu1 %2215 }
 0x50d   : > { %v2235_v60 = vmax.f32 %v3771_v56, %v2216_v13 }
 0x50f   : > { %v2267_v17 = vmax.f32 %v2235_v60, %v2248_v38 }
 0x510   : > { %v3920_v61 = vpop.permute.xlu1 %1267 }
 0x511   : > { %v2273_v22 = vcombine.low %v2263_v59, %v2267_v17  ;;  %v2274_v42 = vcombine.high %v2263_v59, %v2267_v17 }
 0x513   : > { %v2288_v16 = vrot.slane %v2274_v42, %v2973_v36 }
 0x514   : > { %v3922_v55 = vpop.permute.xlu1 %1271 }
 0x51d   : > { %v3918_v32 = vpop.permute.xlu0 %1235  ;;  %v3925_v46 = vpop.permute.xlu1 %1243 }
 0x521   : > { %v2246_v58 = vpop.permute.xlu0 %2245 }
 0x525   : > { %v2254_v31 = vpop.permute.xlu0 %2253 }
 0x529   : > { %v2244_v2 = vpop.permute.xlu0 %2243 }
 0x52d   : > { %v2252_v35 = vpop.permute.xlu0 %2251  ;;  %v3929_v37 = vpop.permute.xlu1 %1880 }
 0x531   : > { %v2214_v63 = vpop.permute.xlu0 %2213  ;;  %v3934_v3 = vpop.permute.xlu1 %1247 }
 0x532   : > { %v2234_v25 = vmax.f32 %v3821_v6, %v2214_v63 }
 0x534   : > { %v2266_v9 = vmax.f32 %v2234_v25, %v2246_v58 }
 0x535   : > { %v2222_v30 = vpop.permute.xlu0 %2221  ;;  %v3941_v52 = vpop.permute.xlu1 %1884 }
 0x536   : > { %v2238_v33 = vmax.f32 %v3835_v8, %v2222_v30 }
 0x538   : > { %v2270_v7 = vmax.f32 %v2238_v33, %v2254_v31  ;;  %v1305_v33 = vsel %vm1292_vm10, %v1304_v4, %v3920_v61 }
 0x539   : > { %v2212_v47 = vpop.permute.xlu0 %2211  ;;  %v1284_v38 = vpop.permute.xlu1 %1283  ;;  %v1306_v28 = vsel %vm1294_vm11, %v1305_v33, %v3922_v55 }
 0x53a   : > { %v2357_v11 = vcombine.low %v2266_v9, %v2270_v7  ;;  %v2233_v50 = vmax.f32 %v3848_v5, %v2212_v47  ;;  %v2358_v62 = vcombine.high %v2266_v9, %v2270_v7 }
 0x53c   : > { %v2365_v6 = vrot.slane %v2357_v11, %v2973_v36  ;;  %v2265_v43 = vmax.f32 %v2233_v50, %v2244_v2  ;;  %v2372_v20 = vrot.slane %v2358_v62, %v2973_v36 }
 0x53d   : > { %v2220_v10 = vpop.permute.xlu0 %2219  ;;  %v3959_v54 = vpop.permute.xlu1 %1920 }
 0x53e   : > { %v2374_v8 = vcombine.high %v2349_v41, %v2365_v6  ;;  %v2237_v44 = vmax.f32 %v3860_v12, %v2220_v10  ;;  %v2281_v12 = vrot.slane %v2273_v22, %v2973_v36  ;;  %v2390_v15 = vcombine.high %v2356_v40, %v2372_v20 }
 0x53f   : > { %v2373_v13 = vcombine.low %v2349_v41, %v2365_v6  ;;  %v2389_v58 = vcombine.low %v2356_v40, %v2372_v20 }
 0x540   : > { %v2388_v56 = vrot.slane %v2374_v8, %v2980_v48  ;;  %v2269_v29 = vmax.f32 %v2237_v44, %v2252_v35  ;;  %v1291_v44 = vsel %vm1290_vm9, %v3787_v1, %v3918_v32  ;;  %v1935_v1 = vsel %vm1290_vm9, %v3808_v45, %v3929_v37  ;;  %v2664_v45 = vld [vmem:[%s4108_s3 + $0x8] sm:$0xff] }
 0x541   : > { %v3943_v24 = vpop.permute.xlu0 %1239  ;;  %v2397_v25 = vrot.slane %v2389_v58, %v2980_v48  ;;  %v3963_v30 = vrot.slane %v2373_v13, %v2980_v48  ;;  %v1288_v47 = vpop.permute.xlu1 %1287 }
 0x542   : > { %2442 = vrot.lane.b32.xlu1 %v2388_v56, %s2827_s25  ;;  %v2289_v5 = vcombine.low %v2265_v43, %v2269_v29  ;;  %v2290_v34 = vcombine.high %v2265_v43, %v2269_v29  ;;  %v2406_v41 = vcombine.high %v2388_v56, %v2820_v0  ;;  %v321_v56 = vld [vmem:[%s4109_s4] sm:$0xff]  ;;  %v1293_v22 = vsel %vm1292_vm10, %v1291_v44, %v3943_v24 }
 0x543   : > { %v2405_v21 = vcombine.high %v3963_v30, %v2820_v0  ;;  %v2407_v50 = vcombine.high %v2397_v25, %v2820_v0  ;;  %v1295_v29 = vsel %vm1294_vm11, %v1293_v22, %v3925_v46  ;;  %v1936_v24 = vsel %vm1292_vm10, %v1935_v1, %v3941_v52 }
 0x544   : > { %v2297_v19 = vrot.slane %v2289_v5, %v2973_v36  ;;  %v2304_v26 = vrot.slane %v2290_v34, %v2973_v36  ;;  %v2404_v36 = vrot.slane %v2390_v15, %v2980_v48  ;;  %v1297_v32 = vsel %vm1296_vm13, %v1295_v29, %v3934_v3 }
 0x545   : > { %v3951_v51 = vpop.permute.xlu0 %1908  ;;  %v1925_v62 = vpop.permute.xlu1 %1924 }
 0x546   : > { %v2306_v27 = vcombine.high %v2281_v12, %v2297_v19  ;;  %v2321_v53 = vcombine.low %v2288_v16, %v2304_v26  ;;  %v2305_v63 = vcombine.low %v2281_v12, %v2297_v19  ;;  %v2322_v39 = vcombine.high %v2288_v16, %v2304_v26 }
 0x547   : > { %v2408_v8 = vcombine.high %v2404_v36, %v2820_v0  ;;  %v1942_v34 = vsel %vm1290_vm9, %v3867_v49, %v3951_v51 }
 0x548   : > { %v2329_v2 = vrot.slane %v2321_v53, %v2980_v48  ;;  %v2320_v35 = vrot.slane %v2306_v27, %v2980_v48  ;;  %v2336_v14 = vrot.slane %v2322_v39, %v2980_v48  ;;  %v3979_v61 = vrot.slane %v2305_v63, %v2980_v48 }
 0x549   : > { %v1276_v31 = vpop.permute.xlu0 %1275  ;;  %v1897_v5 = vpop.permute.xlu1 %1896 }
 0x54a   : > { %2422 = vrot.lane.b32.xlu1 %v2329_v2, %s2825_s17  ;;  %2414 = vrot.lane.b32.xlu0 %v2320_v35, %s2827_s25  ;;  %v1307_v9 = vsel %vm1296_vm13, %v1306_v28, %v1276_v31  ;;  %v2337_v48 = vcombine.high %v3979_v61, %v2820_v0  ;;  %v2338_v17 = vcombine.high %v2320_v35, %v2820_v0  ;;  %v2668_v31 = vld [vmem:[%s4108_s3 + $0x10] sm:$0xff]  ;;  %s215_s25 = sand.u32 1, %s2810_s19  }
 0x54b   : > { %v2339_v59 = vcombine.high %v2329_v2, %v2820_v0  ;;  %v2340_v43 = vcombine.high %v2336_v14, %v2820_v0  ;;  %s2578_s11 = scalar_lea.sflag [#allocation4], %s215_s25 }
 0x54d   : > { %v1913_v23 = vpop.permute.xlu0 %1912  ;;  %v1901_v49 = vpop.permute.xlu1 %1900 }
 0x54e   : > { %2458 = vrot.lane.b32.xlu1 %v2404_v36, %s2822_s14  ;;  %2450 = vrot.lane.b32.xlu0 %v2397_v25, %s2825_s17  ;;  %v1943_v46 = vsel %vm1292_vm10, %v1942_v34, %v1913_v23 }
 0x551   : > { %v1280_v7 = vpop.permute.xlu0 %1279  ;;  %v1905_v13 = vpop.permute.xlu1 %1904 }
 0x552   : > { %v1308_v60 = vsel %vm1298_vm12, %v1307_v9, %v1280_v7  ;;  %2438 = vrot.lane.b32.xlu1 %v2405_v21, %s2828_s26  ;;  %2430 = vrot.lane.b32.xlu0 %v2336_v14, %s2822_s14  ;;  %s2764_s14 = scalar_lea.vmem %s2763_s22, 512 }
 0x553   : > { %v1309_v11 = vsel %vm1300_vm14, %v1308_v60, %v1284_v38 }
 0x554   : > { %v1310_v55 = vsel %vm1302_vm15, %v1309_v11, %v1288_v47 }
 0x555   : > { %2665 = vmatprep.subr.msk.mxu0 %vm327_vm1, %v1310_v55  ;;  %v1917_v57 = vpop.permute.xlu0 %1916 }
 0x556   : > { %2446 = vrot.lane.b32.xlu1 %v2406_v41, %s2826_s23  ;;  %2410 = vrot.lane.b32.xlu0 %v2337_v48, %s2828_s26  ;;  %v1944_v37 = vsel %vm1294_vm11, %v1943_v46, %v1917_v57  ;;  %s2655_s26 = sshll.u32 %s215_s25, 4 }
 0x557   : > { %v1945_v26 = vsel %vm1296_vm13, %v1944_v37, %v3959_v54  ;;  %s217_s6 = scalar_lea.vmem [#allocation3], %s2655_s26 }
 0x558   : > { %v1946_v27 = vsel %vm1298_vm12, %v1945_v26, %v1925_v62  ;;  %s2592_s7 = sshll.u32 %s217_s6, 4  ;;  %s2593_s7 = int_to_ptr.vmem [resolvable:$true] %s2592_s7 }
 0x559   : > { %v1252_v6 = vpop.permute.xlu0 %1251  ;;  %s2758_s12 = scalar_lea.vmem %s2593_s7, 256  ;;  %p2765_p0 = scmp.lt.s32.totalorder %s2593_s7, %s2763_s22 }
 0x55a   : > { %2418 = vrot.lane.b32.xlu1 %v2338_v17, %s2826_s23  ;;  %2454 = vrot.lane.b32.xlu0 %v2407_v50, %s2824_s16  ;;  %v1299_v20 = vsel %vm1298_vm12, %v1297_v32, %v1252_v6  ;;  %p2759_p11 = scmp.ne.s32.totalorder %s2593_s7, %s2758_s12  ;;  %p2766_p1 = scmp.lt.s32.totalorder %s2764_s14, %s2758_s12 }
 0x55c   : > { %p2760_p12 = pnand %p2759_p11, %p2905_p5  ;;  %p2767_p2 = por %p2766_p1, %p2765_p0 }
 0x55d   : > { %v1889_v10 = vpop.permute.xlu0 %1888 }
 0x55e   : > { %2462 = vrot.lane.b32.xlu1 %v2408_v8, %s2823_s15  ;;  %2426 = vrot.lane.b32.xlu0 %v2339_v59, %s2824_s16  ;;  %v1937_v12 = vsel %vm1294_vm11, %v1936_v24, %v1889_v10  ;;  %v2672_v10 = vld [vmem:[%s4108_s3 + $0x18] sm:$0xff]  ;;  %p2761_p13 = pneg %p2760_p12 }
 0x560   : > { %p2768_p3 = pnand %p2767_p2, %p2761_p13 }
 0x561   : > { %v1256_v42 = vpop.permute.xlu0 %1255 }
 0x562   : > { %2434 = vrot.lane.b32.xlu0 %v2340_v43, %s2823_s15  ;;  %407 = vperm.xlu1 %2741, %v321_v56   ;;  %v1301_v16 = vsel %vm1300_vm14, %v1299_v20, %v1256_v42 }
 0x565   : > { %v1893_v18 = vpop.permute.xlu0 %1892 }
 0x566   : > { %v1938_v3 = vsel %vm1296_vm13, %v1937_v12, %v1893_v18 }
 0x567   : > { %v1939_v51 = vsel %vm1298_vm12, %v1938_v3, %v1897_v5 }
 0x568   : > { %v1940_v38 = vsel %vm1300_vm14, %v1939_v51, %v1901_v49 }
 0x569   : > { %v1260_v19 = vpop.permute.xlu0 %1259  ;;  %v1941_v2 = vsel %vm1302_vm15, %v1940_v38, %v1905_v13 }
 0x56a   : > { %v1303_v52 = vsel %vm1302_vm15, %v1301_v16, %v1260_v19 }
 0x56b   : > { %2666 = vmatpush1.msk.msra.mxu0 %vm327_vm1, %v1303_v52 }
 0x56c   : > { %2667 = vmatmul.mubr.msk.f32.vlgmr.msra.gmra.mxu0 %vm323_vm8, %v2664_v45 }
 0x56d   : > { %v1929_v40 = vpop.permute.xlu0 %1928  ;;  %2552 = vmatprep.mubr.f32.mxu0 %v2820_v0 }
 0x56e   : > { %v1947_v53 = vsel %vm1300_vm14, %v1946_v27, %v1929_v40 }
 0x571   : > { %v1933_v15 = vpop.permute.xlu0 %1932 }
 0x572   : > { %v1948_v58 = vsel %vm1302_vm15, %v1947_v53, %v1933_v15 }
 0x573   : > { %2669 = vmatprep.subr.msk.mxu1 %vm327_vm1, %v1948_v58 }
 0x574   : > { %2670 = vmatpush1.msk.msra.mxu1 %vm327_vm1, %v1941_v2  ;;  %v400_v44 = vpop.f32.mrf.mxu1 }
 0x575   : > { %2671 = vmatmul.mubr.msk.f32.vlgmr.msra.gmra.mxu1 %vm323_vm8, %v2668_v31 }
 0x576   : > { %v402_v56 = vpop.f32.mrf.mxu1 }
 0x5b4   : > { %v2443_v0 = vpop.permute.xlu1 %2442 }
 0x5bc   : > { %v2423_v35 = vpop.permute.xlu1 %2422  ;;  %v2415_v36 = vpop.permute.xlu0 %2414 }
 0x5c0   : > { %v2459_v54 = vpop.permute.xlu1 %2458  ;;  %v2451_v63 = vpop.permute.xlu0 %2450 }
 0x5c4   : > { %v2439_v39 = vpop.permute.xlu1 %2438  ;;  %v2431_v23 = vpop.permute.xlu0 %2430 }
 0x5c5   : > { %v2472_v25 = vsel %vm1290_vm9, %v3963_v30, %v2439_v39 }
 0x5c6   : > { %v2473_v4 = vsel %vm1292_vm10, %v2472_v25, %v2443_v0 }
 0x5c8   : > { %v2447_v33 = vpop.permute.xlu1 %2446  ;;  %v2411_v28 = vpop.permute.xlu0 %2410 }
 0x5c9   : > { %v2474_v9 = vsel %vm1294_vm11, %v2473_v4, %v2447_v33  ;;  %v2465_v7 = vsel %vm1290_vm9, %v3979_v61, %v2411_v28 }
 0x5ca   : > { %v2466_v14 = vsel %vm1292_vm10, %v2465_v7, %v2415_v36  ;;  %v2475_v60 = vsel %vm1296_vm13, %v2474_v9, %v2451_v63 }
 0x5cc   : > { %v2419_v21 = vpop.permute.xlu1 %2418  ;;  %v2455_v47 = vpop.permute.xlu0 %2454 }
 0x5cd   : > { %v2467_v11 = vsel %vm1294_vm11, %v2466_v14, %v2419_v21  ;;  %v2476_v55 = vsel %vm1298_vm12, %v2475_v60, %v2455_v47 }
 0x5ce   : > { %v2477_v57 = vsel %vm1300_vm14, %v2476_v55, %v2459_v54  ;;  %v2468_v41 = vsel %vm1296_vm13, %v2467_v11, %v2423_v35 }
 0x5d0   : > { %v2463_v30 = vpop.permute.xlu1 %2462  ;;  %v2427_v48 = vpop.permute.xlu0 %2426 }
 0x5d1   : > { %v2478_v6 = vsel %vm1302_vm15, %v2477_v57, %v2463_v30  ;;  %v2469_v61 = vsel %vm1298_vm12, %v2468_v41, %v2427_v48 }
 0x5d2   : > { %2673 = vmatprep.subr.msk.mxu0 %vm327_vm1, %v2478_v6  ;;  %v2470_v17 = vsel %vm1300_vm14, %v2469_v61, %v2431_v23 }
 0x5d4   : > { %v2435_v50 = vpop.permute.xlu0 %2434 }
 0x5d5   : > { %v2471_v8 = vsel %vm1302_vm15, %v2470_v17, %v2435_v50 }
 0x5d6   : > { %2674 = vmatpush1.msk.msra.mxu0 %vm327_vm1, %v2471_v8 }
 0x5d7   : > { %2675 = vmatmul.mubr.msk.f32.vlgmr.msra.gmra.mxu0 %vm323_vm8, %v2672_v10 }
 0x5dd   : > { %v408_v59 = vpop.permute.xlu1 %407 }
 0x5de   : > { %v410_v62 = vadd.f32 %v408_v59, %v400_v44  ;;  %v411_v42 = vadd.f32 %v408_v59, %v402_v56 }
 0x62c   : > { %v1386_v22 = vpop.f32.mrf.mxu0 }
 0x62d   : > { %v1391_v43 = vadd.f32 %v1386_v22, %v410_v62 }
 0x62e   : > { %v1388_v29 = vpop.f32.mrf.mxu0 }
 0x62f   : > { %v1392_v5 = vadd.f32 %v1388_v29, %v411_v42 }
 0x635   : > { %v2024_v18 = vpop.f32.mrf.mxu1 }
 0x636   : > { %v2029_v1 = vadd.f32 %v2024_v18, %v1391_v43 }
 0x637   : > { %v2026_v32 = vpop.f32.mrf.mxu1 }
 0x638   : > { %v2030_v34 = vadd.f32 %v2026_v32, %v1392_v5 }
 0x697   : > { %v2554_v24 = vpop.f32.mrf.mxu0 }
 0x698   : > { %v2559_v20 = vadd.f32 %v2554_v24, %v2029_v1 }
 0x699   : > { %v2556_v46 = vpop.f32.mrf.mxu0 }
 0x69a   : > { %v2676_v12 = vmul.f32 -1.442695, %v2559_v20  ;;  %v2560_v16 = vadd.f32 %v2556_v46, %v2030_v34 }
 0x69c   : > { %2750 = vpow2.f32 %v2676_v12  ;;  %v2677_v19 = vmul.f32 -1.442695, %v2560_v16 }
 0x69e   : > { %2752 = vpow2.f32 %v2677_v19 }
 0x6a9   : > { %v2751_v45 = vpop.eup %2750 }
 0x6aa   : > { %v2567_v37 = vadd.f32 1.0, %v2751_v45 }
 0x6ab   : > { %v2753_v3 = vpop.eup %2752 }
 0x6ac   : > { %2754 = vrcp.f32 %v2567_v37  ;;  %v2568_v52 = vadd.f32 1.0, %v2753_v3 }
 0x6ae   : > { %2756 = vrcp.f32 %v2568_v52 }
 0x6b9   : > { %v2755_v49 = vpop.eup %2754 }
 0x6ba   : > { %v2573_v26 = vmul.f32 %v2755_v49, %v2559_v20 }
 0x6bb   : > { %v2757_v51 = vpop.eup %2756 }
 0x6bc   : > { %2575 = vst [vmem:[%s217_s6] sm:$0xff] %v2573_v26  ;;  %v2574_v40 = vmul.f32 %v2757_v51, %v2560_v16 }
 0x6be   : > { %2576 = vst [vmem:[%s217_s6 + $0x8] sm:$0xff] %v2574_v40 }
 0x6bf   : > { %2771 = shalt.err (!%p2768_p3)
}
 0x6c0   : > { %s2772_s15 = scalar_lea.hbm %s2590_s10, 256  ;;  %s2776_s23 = scalar_lea.hbm %s4110_s5, 512 }
 0x6c1   : > { %p2773_p4 = scmp.ne.s32.totalorder %s2590_s10, %s2772_s15  ;;  %p2777_p9 = scmp.lt.s32.totalorder %s2590_s10, %s4110_s5 }
 0x6c2   : > { %p2778_p10 = scmp.lt.s32.totalorder %s2776_s23, %s2772_s15 }
 0x6c3   : > { %p2774_p7 = pnand %p2773_p4, %p2905_p5 }
 0x6c4   : > { %p2779_p11 = por %p2778_p10, %p2777_p9 }
 0x6c5   : > { %p2775_p8 = pneg %p2774_p7 }
 0x6c7   : > { %p2780_p12 = pnand %p2779_p11, %p2775_p8 }
 0x6c9   : > { %2783 = shalt.err (!%p2780_p12)
}
 0x6ca   : > { %2685 = dma.vmem_to_hbm [thread:$0]  (%p2905_p5), %s2593_s7, 256, %s2590_s10, %s2578_s11  }
 0x6cb PF: > { %p2691_p13 = scmp.ge.s32.totalorder %s2818_s21, 2  ;;  %s2604_s30 = sand.u32 1, %s2806_s18  }
 0x6cc   : > { %s2605_s6 = scalar_lea.sflag [#allocation4], %s2604_s30 }
 0x6cd   : > { %p2688_p0 = pnand %p2691_p13, %p2909_p6 }
 0x6cf   : > { %p2689_p1 = pneg %p2688_p0 }
 0x6d1   : > { %2801 = dma.done.wait (%p2689_p1), %s2605_s6, 256  }
 0x6d2   : > { %2803 = vsyncadd (%p2689_p1), %s2605_s6, 4294967040  ;;  %p15_p2 = scmp.ge.s32.totalorder %s2892_s24, 4   ;;  %s4113_s18 = smov %s2810_s19 }
 0x6d3   : > { %s4114_s19 = smov %s2814_s20  ;;  %s4115_s20 = smov %s2903_s27 }
 0x6d4   : > { %s4116_s21 = smov %s2892_s24  ;;  %17 = sbr.rel (!%p15_p2) target bundleno = 3 (0x3), region = 78 }
 0x6d9   :  { %2610 = vsyncpa [#allocation4], 1 }
 0x6da   :  { %2612 = vsyncpa [#allocation4 + $0x1], 1 }

</bundles_post_ra>
